<compile_context>
chip_gen: v7x
topology: tpu7x:2x2x1
jax: 0.10.0
libtpu: 0.0.40
codegen_flags: <defaults>
</compile_context>

<pallas_src>
import jax
import jax.numpy as jnp
import numpy as np
from jax import lax
from jax.experimental import pallas as pl
from jax.experimental.pallas import tpu as pltpu

# ---- MANO constants -------------------------------------------------------
NUM_VERTS = 778
NUM_JOINTS = 16            # root + 15 articulated joints
NUM_BETAS = 10
POSE_DIM = 45              # 15 joints * 3 (axis-angle)
POSE_FEAT = 135            # 15 * 9 (rotmat - I)
FULL_POSE = 48             # 3 (global orient) + 45
PARAM_DIM = NUM_BETAS + POSE_FEAT      # 145 fused blendshape coefficients
V_PAD = 1024               # 778 padded to a multiple of 256 lanes (v6e/v7x MXU)

PARENTS = np.array([-1, 0, 1, 2, 0, 4, 5, 0, 7, 8, 0, 10, 11, 0, 13, 14],
                   dtype=np.int32)


def _round_up(x, m):
    return ((x + m - 1) // m) * m


def _pad_last(x, size):
    pad = size - x.shape[-1]
    return jnp.pad(x, [(0, 0)] * (x.ndim - 1) + [(0, pad)])


# ---- Pallas kernel: fused blendshapes + LBS skinning, batched --------------
def _mano_lbs_kernel(params_ref, a_ref, vt_ref, slab_ref, w_ref, o_ref):
    # params_ref: (BT, 145)        f32  [betas | pose_feature] per element
    # a_ref:      (1, 16*BT, 16)   f32  relative joint transforms, rows = k*BT + b
    # vt_ref:     (1, 3*V_PAD)     f32  template verts, coords concatenated on lanes
    # slab_ref:   (145, 3*V_PAD)   bf16 fused [shapedirs; posedirs] slab
    # w_ref:      (16, V_PAD)      f32  LBS skinning weights (joint-major)
    # o_ref:      (BT, 3*V_PAD)    f32  skinned vertices, coords concatenated on lanes
    bt = params_ref.shape[0]

    # fused shape+pose blendshapes for the whole batch tile: one lane-dense dot
    p_bf = params_ref[...].astype(jnp.bfloat16)
    vp = jnp.dot(p_bf, slab_ref[...], preferred_element_type=jnp.float32)
    vp = vp + vt_ref[...]                     # (BT, 3*V_PAD) posed, un-skinned verts

    # per-vertex blended transforms for every element of the tile:
    #   t2[k*BT + b, v] = sum_j A[b, j, k] * W[j, v]
    t2 = jnp.dot(a_ref[0], w_ref[...], preferred_element_type=jnp.float32)

    # skinning on full (BT, V_PAD) vreg slabs; translation row added directly
    # (no homogeneous ones); each coordinate stored straight into o_ref.
    vps = [vp[:, j * V_PAD:(j + 1) * V_PAD] for j in range(3)]  # aligned lane slices
    for c in range(3):
        acc = t2[(4 * c + 3) * bt:(4 * c + 4) * bt, :]          # translation
        for j in range(3):
            k = 4 * c + j
            acc = acc + t2[k * bt:(k + 1) * bt, :] * vps[j]
        o_ref[:, c * V_PAD:(c + 1) * V_PAD] = acc


def _lbs_pallas(params, a_kmaj, vt_row, slab, w_t, bt):
    b_pad = params.shape[0]
    n_tiles = b_pad // bt
    return pl.pallas_call(
        _mano_lbs_kernel,
        out_shape=jax.ShapeDtypeStruct((b_pad, 3 * V_PAD), jnp.float32),
        grid_spec=pltpu.PrefetchScalarGridSpec(
            num_scalar_prefetch=0,
            grid=(n_tiles,),
            in_specs=[
                pl.BlockSpec((bt, PARAM_DIM), lambda i: (i, 0)),
                pl.BlockSpec((1, 16 * bt, NUM_JOINTS), lambda i: (i, 0, 0)),
                pl.BlockSpec((1, 3 * V_PAD), lambda i: (0, 0)),
                pl.BlockSpec((PARAM_DIM, 3 * V_PAD), lambda i: (0, 0)),
                pl.BlockSpec((NUM_JOINTS, V_PAD), lambda i: (0, 0)),
            ],
            out_specs=pl.BlockSpec((bt, 3 * V_PAD), lambda i: (i, 0)),
        ),
        compiler_params=pltpu.CompilerParams(
            dimension_semantics=("parallel",)),   # independent batch tiles
    )(params, a_kmaj, vt_row, slab, w_t)


def _lbs_skin_pallas(betas, pose_feature, a_flat, hand):
    """Run the Pallas kernel over the whole batch (tiled along sublanes)."""
    B = betas.shape[0]
    bt = min(64, _round_up(max(B, 1), 8))
    b_pad = _round_up(B, bt)
    params = jnp.concatenate([betas, pose_feature], axis=1).astype(jnp.float32)
    params = jnp.pad(params, ((0, b_pad - B), (0, 0)))              # (B_pad, 145)
    a_pad = jnp.pad(a_flat.astype(jnp.float32),
                    ((0, b_pad - B), (0, 0), (0, 0)))               # (B_pad, 16, 16)
    # (B_pad, joint, k) -> (n_tiles, k*BT + b_local, joint)  (k-major grouping)
    n_tiles = b_pad // bt
    a_k = a_pad.reshape(n_tiles, bt, NUM_JOINTS, 16)
    a_k = jnp.transpose(a_k, (0, 3, 1, 2)).reshape(n_tiles, 16 * bt, NUM_JOINTS)

    out = _lbs_pallas(params, a_k, hand['vt_row'], hand['slab'], hand['w_t'], bt)
    verts = out.reshape(b_pad, 3, V_PAD)[:B, :, :NUM_VERTS]
    return jnp.transpose(verts, (0, 2, 1))                          # (B, 778, 3)


# ---- Plain-JAX glue (small per-joint math) ---------------------------------
def rodrigues(aa):
    """Axis-angle (..., 3) -> rotation matrices (..., 3, 3)."""
    eps = 1e-8
    angle = jnp.sqrt(jnp.sum(aa * aa, axis=-1, keepdims=True) + eps)
    axis = aa / angle
    cos = jnp.cos(angle)[..., None]
    sin = jnp.sin(angle)[..., None]
    rx, ry, rz = axis[..., 0], axis[..., 1], axis[..., 2]
    zeros = jnp.zeros_like(rx)
    K = jnp.stack([zeros, -rz, ry,
                   rz, zeros, -rx,
                   -ry, rx, zeros], axis=-1).reshape(aa.shape[:-1] + (3, 3))
    eye = jnp.eye(3, dtype=aa.dtype)
    return eye + sin * K + (1.0 - cos) * jnp.matmul(K, K)


def rigid_transform(rot_mats, joints, parents):
    """Forward kinematics over the 16-joint MANO tree (smplx convention)."""
    B = joints.shape[0]
    rel_joints = joints.at[:, 1:].add(-joints[:, parents[1:]])
    top = jnp.concatenate([rot_mats, rel_joints[..., None]], axis=-1)  # (B,16,3,4)
    bottom = jnp.zeros((B, NUM_JOINTS, 1, 4), jnp.float32).at[..., 3].set(1.0)
    tmat = jnp.concatenate([top, bottom], axis=-2)                     # (B,16,4,4)
    chain = [tmat[:, 0]]
    for i in range(1, NUM_JOINTS):
        chain.append(jnp.matmul(chain[int(parents[i])], tmat[:, i]))
    transforms = jnp.stack(chain, axis=1)                              # (B,16,4,4)
    posed_joints = transforms[..., :3, 3]
    corr = jnp.einsum('bjmk,bjk->bjm', transforms[..., :3], joints)    # (B,16,4)
    rel = jnp.concatenate([transforms[..., :3],
                           (transforms[..., 3] - corr)[..., None]], axis=-1)
    return posed_joints, rel


def _lbs_reference(betas, pose_feature, a_flat, v_template, shapedirs,
                   posedirs, lbs_weights):
    """Pure-JAX reference for the Pallas kernel (validation only)."""
    B = betas.shape[0]
    v_shaped = v_template[None] + jnp.einsum('bl,vcl->bvc', betas, shapedirs)
    v_posed = v_shaped + jnp.einsum('bp,pvc->bvc', pose_feature, posedirs)
    T = jnp.einsum('vj,bjk->bvk', lbs_weights, a_flat)
    T = T.reshape(B, NUM_VERTS, 4, 4)
    vh = jnp.concatenate(
        [v_posed, jnp.ones((B, NUM_VERTS, 1), jnp.float32)], axis=-1)
    return jnp.einsum('bvmk,bvk->bvm', T, vh)[..., :3]


# ---- ManoModel -------------------------------------------------------------
class ManoModel:
    """JAX/Pallas port of homan's ManoModel.

    mano_root is accepted for signature compatibility but ignored: MANO
    parameters are synthesized deterministically (no .pkl loading).
    """

    def __init__(self, mano_root=None, pca_comps=30, batch_size=1, seed=0):
        del mano_root, batch_size
        self.pca_comps = pca_comps
        key = jax.random.PRNGKey(seed)
        k_r, k_l = jax.random.split(key, 2)
        self.rh = self._make_hand(k_r)
        self.lh = self._make_hand(k_l)
        self.rh_mean = self.rh['hand_mean']
        self.lh_mean = self.lh['hand_mean']

    def _make_hand(self, key):
        ks = jax.random.split(key, 7)
        v_template = 0.1 * jax.random.normal(ks[0], (NUM_VERTS, 3), jnp.float32)
        shapedirs = 0.01 * jax.random.normal(
            ks[1], (NUM_VERTS, 3, NUM_BETAS), jnp.float32)
        posedirs = 0.01 * jax.random.normal(
            ks[2], (POSE_FEAT, NUM_VERTS, 3), jnp.float32)
        j_regressor = jax.nn.softmax(
            jax.random.normal(ks[3], (NUM_JOINTS, NUM_VERTS), jnp.float32), -1)
        lbs_weights = jax.nn.softmax(
            jax.random.normal(ks[4], (NUM_VERTS, NUM_JOINTS), jnp.float32), -1)
        hand_mean = 0.1 * jax.random.normal(ks[5], (POSE_DIM,), jnp.float32)
        hand_components = 0.5 * jax.random.normal(
            ks[6], (self.pca_comps, POSE_DIM), jnp.float32)

        # -- kernel-layout constants (vertex dim last, padded to V_PAD lanes) --
        # fused blendshape slab (145, 3*V_PAD), bf16 (f32 MXU accumulation):
        #   rows 0..9   -> shapedirs[v, c, l]
        #   rows 10..144-> posedirs[p, v, c]
        sd_lane = jnp.transpose(shapedirs, (2, 1, 0))    # (10, 3, V)
        pd_lane = jnp.transpose(posedirs, (0, 2, 1))     # (135, 3, V)
        blend = jnp.concatenate([sd_lane, pd_lane], axis=0)       # (145, 3, V)
        slab = _pad_last(blend, V_PAD).reshape(
            PARAM_DIM, 3 * V_PAD).astype(jnp.bfloat16)
        vt_row = _pad_last(v_template.T, V_PAD).reshape(1, 3 * V_PAD)  # f32
        w_t = _pad_last(lbs_weights.T, V_PAD)                          # (16, V_PAD)

        # pre-regressed joint dirs: avoids recomputing full-mesh v_shaped
        j_template = jnp.einsum('jv,vc->jc', j_regressor, v_template)        # (16,3)
        j_shapedirs = jnp.einsum('jv,vcl->jcl', j_regressor, shapedirs)      # (16,3,10)

        hand = dict(
            v_template=v_template, shapedirs=shapedirs, posedirs=posedirs,
            j_regressor=j_regressor, lbs_weights=lbs_weights,
            hand_mean=hand_mean, hand_components=hand_components,
            slab=slab, vt_row=vt_row, w_t=w_t,
            j_template=j_template, j_shapedirs=j_shapedirs,
        )
        return hand

    # ---- core LBS forward ---------------------------------------------
    def _lbs_forward(self, hand, betas, global_orient, hand_pose, transl,
                     use_pallas=True):
        B = betas.shape[0]
        full_pose = jnp.concatenate([global_orient, hand_pose], axis=1)  # (B,48)
        rot_mats = rodrigues(full_pose.reshape(B, NUM_JOINTS, 3))        # (B,16,3,3)

        # small glue: rest joints (pre-regressed dirs) -> forward kinematics
        joints_rest = hand['j_template'][None] + jnp.einsum(
            'bl,jcl->bjc', betas, hand['j_shapedirs'])
        posed_joints, rel_transforms = rigid_transform(
            rot_mats, joints_rest, PARENTS)

        pose_feature = (rot_mats[:, 1:] -
                        jnp.eye(3, dtype=jnp.float32)).reshape(B, POSE_FEAT)
        a_flat = rel_transforms.reshape(B, NUM_JOINTS, 16)

        if use_pallas:
            verts = _lbs_skin_pallas(betas, pose_feature, a_flat, hand)
        else:
            verts = _lbs_reference(betas, pose_feature, a_flat,
                                   hand['v_template'], hand['shapedirs'],
                                   hand['posedirs'], hand['lbs_weights'])
        verts = verts + transl[:, None]
        joints = posed_joints + transl[:, None]
        # TODO(synk): real MANO layer optionally appends 5 fingertip joints
        # selected from the mesh; synthetic model returns the 16 skeleton joints.
        return verts, joints, full_pose

    # ---- public API matching the torch module --------------------------
    def forward(self, mano_pose=None, rot=None, betas=None, side='right',
                flat_hand_mean=False, use_pallas=True):
        mano_pose = jnp.asarray(mano_pose, jnp.float32)
        rot = jnp.asarray(rot, jnp.float32)
        flatten = mano_pose.ndim == 1
        if flatten:
            mano_pose = mano_pose[None]
        if rot.ndim == 1:
            rot = rot[None]
        B = mano_pose.shape[0]
        if betas is None:
            betas = jnp.zeros((B, NUM_BETAS), jnp.float32)
        else:
            betas = jnp.asarray(betas, jnp.float32)
            if betas.ndim == 1:
                betas = betas[None]
        if side == 'right':
            hand = self.rh
        elif side == 'left':
            hand = self.lh
        else:
            raise ValueError(f'{side} not in [left|right]')
        if not flat_hand_mean:
            mano_pose = mano_pose + hand['hand_mean'][None]
        hand_trans = jnp.zeros((B, 3), jnp.float32)
        verts, joints, full_pose = self._lbs_forward(
            hand, betas, rot, mano_pose, hand_trans, use_pallas)
        if flatten:
            verts = verts[0]
            joints = joints[0]
        return {'verts': verts, 'joints': joints, 'hand_aa_pose': full_pose}

    def forward_pca(self, pca_pose=None, rot=None, betas=None, side='right',
                    flat_hand_mean=False):
        pca_pose = jnp.asarray(pca_pose, jnp.float32)
        rot = jnp.asarray(rot, jnp.float32)
        flatten = pca_pose.ndim == 1
        if flatten:
            pca_pose = pca_pose[None]
        if rot.ndim == 1:
            rot = rot[None]
        B = pca_pose.shape[0]
        if betas is None:
            betas = jnp.zeros((B, NUM_BETAS), jnp.float32)
        else:
            betas = jnp.asarray(betas, jnp.float32)
            if betas.ndim == 1:
                betas = betas[None]
        if side == 'right':
            hand = self.rh
        elif side == 'left':
            hand = self.lh
        else:
            raise ValueError(f'{side} not in [left|right]')
        hand_pose = jnp.einsum('bi,ij->bj', pca_pose[:, :self.pca_comps],
                               hand['hand_components'])
        if side == 'left':
            hand_pose = hand_pose.at[:, 1::3].multiply(-1.0)
            hand_pose = hand_pose.at[:, 2::3].multiply(-1.0)
        if not flat_hand_mean:
            hand_pose = hand_pose + hand['hand_mean'][None]
        hand_trans = jnp.zeros((B, 3), jnp.float32)
        verts, joints, full_pose = self._lbs_forward(
            hand, betas, rot, hand_pose, hand_trans, True)
        if flatten:
            verts = verts[0]
            joints = joints[0]
        return {'verts': verts, 'joints': joints, 'hand_aa_pose': full_pose}


# ---- main ------------------------------------------------------------------
if __name__ == "__main__":
    B = 2
    key = jax.random.PRNGKey(0)
    k1, k2, k3, k4 = jax.random.split(key, 4)
    mano_pose = 0.2 * jax.random.normal(k1, (B, POSE_DIM), jnp.float32)
    rot = 0.2 * jax.random.normal(k2, (B, 3), jnp.float32)
    betas = 0.5 * jax.random.normal(k3, (B, NUM_BETAS), jnp.float32)

    model = ManoModel(mano_root=None, pca_comps=6, batch_size=B)

    # right hand, Pallas path
    res = model.forward(mano_pose=mano_pose, rot=rot, betas=betas, side='right')
    jax.block_until_ready(res['verts'])

    # validate the Pallas LBS kernel against the pure-JAX f32 reference
    ref = model.forward(mano_pose=mano_pose, rot=rot, betas=betas,
                        side='right', use_pallas=False)
    np.testing.assert_allclose(np.asarray(res['verts']),
                               np.asarray(ref['verts']),
                               rtol=2e-3, atol=2e-3)

    # left hand + PCA path (both go through the same kernel)
    res_l = model.forward(mano_pose=mano_pose, rot=rot, betas=betas, side='left')
    pca_pose = 0.3 * jax.random.normal(k4, (B, 6), jnp.float32)
    res_pca = model.forward_pca(pca_pose=pca_pose, rot=rot, betas=betas,
                                side='right')
    jax.block_until_ready((res_l['verts'], res_pca['verts']))

    assert res['verts'].shape == (B, NUM_VERTS, 3)
    assert res['joints'].shape == (B, NUM_JOINTS, 3)
    assert res['hand_aa_pose'].shape == (B, FULL_POSE)
    print("KERNEL_OK")
</pallas_src>

<mosaic_0001>
module attributes {stable_mosaic.version = 11 : i64} {
  func.func @_mano_lbs_kernel(%arg0: i32, %arg1: memref<8x145xf32, #tpu.memory_space<vmem>>, %arg2: memref<1x128x16xf32, #tpu.memory_space<vmem>>, %arg3: memref<1x3072xf32, #tpu.memory_space<vmem>>, %arg4: memref<145x3072xbf16, #tpu.memory_space<vmem>>, %arg5: memref<16x1024xf32, #tpu.memory_space<vmem>>, %arg6: memref<8x3072xf32, #tpu.memory_space<vmem>>) attributes {dimension_semantics = [#tpu.dimension_semantics<parallel>], iteration_bounds = array<i64: 1>, scalar_prefetch = 0 : i64, scratch_operands = 0 : i64, tpu.core_type = #tpu.core_type<tc>, window_params = [{transform_indices = @transform_0, window_bounds = array<i64: 8, 145>}, {transform_indices = @transform_1, window_bounds = array<i64: 1, 128, 16>}, {pipeline_mode = #tpu.pipeline_mode<synchronous>, transform_indices = @transform_2, window_bounds = array<i64: 1, 3072>}, {pipeline_mode = #tpu.pipeline_mode<synchronous>, transform_indices = @transform_3, window_bounds = array<i64: 145, 3072>}, {pipeline_mode = #tpu.pipeline_mode<synchronous>, transform_indices = @transform_4, window_bounds = array<i64: 16, 1024>}, {transform_indices = @transform_5, window_bounds = array<i64: 8, 3072>}]} {
    %c0 = arith.constant 0 : index
    %c0_0 = arith.constant 0 : index
    %0 = vector.load %arg1[%c0, %c0_0] : memref<8x145xf32, #tpu.memory_space<vmem>>, vector<8x145xf32>
    %1 = arith.truncf %0 : vector<8x145xf32> to vector<8x145xbf16>
    %c0_1 = arith.constant 0 : index
    %c0_2 = arith.constant 0 : index
    %2 = vector.load %arg4[%c0_1, %c0_2] : memref<145x3072xbf16, #tpu.memory_space<vmem>>, vector<145x3072xbf16>
    %cst = arith.constant dense<0.000000e+00> : vector<8x3072xf32>
    %3 = tpu.matmul %1, %2, %cst {dimension_numbers = #tpu.dot_dimension_numbers<[1], [0], [0], [1], [0, 0, 1, 1], [], []>} : vector<8x145xbf16>, vector<145x3072xbf16>, vector<8x3072xf32> -> vector<8x3072xf32>
    %c0_3 = arith.constant 0 : index
    %c0_4 = arith.constant 0 : index
    %4 = vector.load %arg3[%c0_3, %c0_4] : memref<1x3072xf32, #tpu.memory_space<vmem>>, vector<1x3072xf32>
    %5 = vector.broadcast %4 : vector<1x3072xf32> to vector<8x3072xf32>
    %6 = arith.addf %3, %5 : vector<8x3072xf32>
    %c0_5 = arith.constant 0 : index
    %c0_6 = arith.constant 0 : index
    %c0_7 = arith.constant 0 : index
    %7 = vector.load %arg2[%c0_5, %c0_6, %c0_7] : memref<1x128x16xf32, #tpu.memory_space<vmem>>, vector<1x128x16xf32>
    %8 = vector.shape_cast %7 : vector<1x128x16xf32> to vector<128x16xf32>
    %c0_8 = arith.constant 0 : index
    %c0_9 = arith.constant 0 : index
    %9 = vector.load %arg5[%c0_8, %c0_9] : memref<16x1024xf32, #tpu.memory_space<vmem>>, vector<16x1024xf32>
    %cst_10 = arith.constant dense<0.000000e+00> : vector<128x1024xf32>
    %10 = tpu.matmul %8, %9, %cst_10 {dimension_numbers = #tpu.dot_dimension_numbers<[1], [0], [0], [1], [0, 0, 1, 1], [], []>} : vector<128x16xf32>, vector<16x1024xf32>, vector<128x1024xf32> -> vector<128x1024xf32>
    %11 = vector.extract_strided_slice %6 {offsets = [0, 0], sizes = [8, 1024], strides = [1, 1]} : vector<8x3072xf32> to vector<8x1024xf32>
    %12 = vector.extract_strided_slice %6 {offsets = [0, 1024], sizes = [8, 1024], strides = [1, 1]} : vector<8x3072xf32> to vector<8x1024xf32>
    %13 = vector.extract_strided_slice %6 {offsets = [0, 2048], sizes = [8, 1024], strides = [1, 1]} : vector<8x3072xf32> to vector<8x1024xf32>
    %14 = vector.extract_strided_slice %10 {offsets = [24, 0], sizes = [8, 1024], strides = [1, 1]} : vector<128x1024xf32> to vector<8x1024xf32>
    %15 = vector.extract_strided_slice %10 {offsets = [0, 0], sizes = [8, 1024], strides = [1, 1]} : vector<128x1024xf32> to vector<8x1024xf32>
    %16 = arith.mulf %15, %11 : vector<8x1024xf32>
    %17 = arith.addf %14, %16 : vector<8x1024xf32>
    %18 = vector.extract_strided_slice %10 {offsets = [8, 0], sizes = [8, 1024], strides = [1, 1]} : vector<128x1024xf32> to vector<8x1024xf32>
    %19 = arith.mulf %18, %12 : vector<8x1024xf32>
    %20 = arith.addf %17, %19 : vector<8x1024xf32>
    %21 = vector.extract_strided_slice %10 {offsets = [16, 0], sizes = [8, 1024], strides = [1, 1]} : vector<128x1024xf32> to vector<8x1024xf32>
    %22 = arith.mulf %21, %13 : vector<8x1024xf32>
    %23 = arith.addf %20, %22 : vector<8x1024xf32>
    %c0_11 = arith.constant 0 : index
    %c0_12 = arith.constant 0 : index
    %24 = vector.load %arg6[%c0_11, %c0_12] : memref<8x3072xf32, #tpu.memory_space<vmem>>, vector<8x1024xf32>
    tpu.vector_store %arg6[%c0_11, %c0_12], %23 {strides = array<i32>} : memref<8x3072xf32, #tpu.memory_space<vmem>>, vector<8x1024xf32>,
    %25 = vector.extract_strided_slice %10 {offsets = [56, 0], sizes = [8, 1024], strides = [1, 1]} : vector<128x1024xf32> to vector<8x1024xf32>
    %26 = vector.extract_strided_slice %10 {offsets = [32, 0], sizes = [8, 1024], strides = [1, 1]} : vector<128x1024xf32> to vector<8x1024xf32>
    %27 = arith.mulf %26, %11 : vector<8x1024xf32>
    %28 = arith.addf %25, %27 : vector<8x1024xf32>
    %29 = vector.extract_strided_slice %10 {offsets = [40, 0], sizes = [8, 1024], strides = [1, 1]} : vector<128x1024xf32> to vector<8x1024xf32>
    %30 = arith.mulf %29, %12 : vector<8x1024xf32>
    %31 = arith.addf %28, %30 : vector<8x1024xf32>
    %32 = vector.extract_strided_slice %10 {offsets = [48, 0], sizes = [8, 1024], strides = [1, 1]} : vector<128x1024xf32> to vector<8x1024xf32>
    %33 = arith.mulf %32, %13 : vector<8x1024xf32>
    %34 = arith.addf %31, %33 : vector<8x1024xf32>
    %c0_13 = arith.constant 0 : index
    %c1024 = arith.constant 1024 : index
    %35 = vector.load %arg6[%c0_13, %c1024] : memref<8x3072xf32, #tpu.memory_space<vmem>>, vector<8x1024xf32>
    tpu.vector_store %arg6[%c0_13, %c1024], %34 {strides = array<i32>} : memref<8x3072xf32, #tpu.memory_space<vmem>>, vector<8x1024xf32>,
    %36 = vector.extract_strided_slice %10 {offsets = [88, 0], sizes = [8, 1024], strides = [1, 1]} : vector<128x1024xf32> to vector<8x1024xf32>
    %37 = vector.extract_strided_slice %10 {offsets = [64, 0], sizes = [8, 1024], strides = [1, 1]} : vector<128x1024xf32> to vector<8x1024xf32>
    %38 = arith.mulf %37, %11 : vector<8x1024xf32>
    %39 = arith.addf %36, %38 : vector<8x1024xf32>
    %40 = vector.extract_strided_slice %10 {offsets = [72, 0], sizes = [8, 1024], strides = [1, 1]} : vector<128x1024xf32> to vector<8x1024xf32>
    %41 = arith.mulf %40, %12 : vector<8x1024xf32>
    %42 = arith.addf %39, %41 : vector<8x1024xf32>
    %43 = vector.extract_strided_slice %10 {offsets = [80, 0], sizes = [8, 1024], strides = [1, 1]} : vector<128x1024xf32> to vector<8x1024xf32>
    %44 = arith.mulf %43, %13 : vector<8x1024xf32>
    %45 = arith.addf %42, %44 : vector<8x1024xf32>
    %c0_14 = arith.constant 0 : index
    %c2048 = arith.constant 2048 : index
    %46 = vector.load %arg6[%c0_14, %c2048] : memref<8x3072xf32, #tpu.memory_space<vmem>>, vector<8x1024xf32>
    tpu.vector_store %arg6[%c0_14, %c2048], %45 {strides = array<i32>} : memref<8x3072xf32, #tpu.memory_space<vmem>>, vector<8x1024xf32>,
    return
  }
  func.func @transform_0(%arg0: i32) -> (i32, i32) {
    %c0_i32 = arith.constant 0 : i32
    %c0_i32_0 = arith.constant 0 : i32
    return %arg0, %c0_i32 : i32, i32
  }
  func.func @transform_1(%arg0: i32) -> (i32, i32, i32) {
    %c0_i32 = arith.constant 0 : i32
    %c0_i32_0 = arith.constant 0 : i32
    %c0_i32_1 = arith.constant 0 : i32
    return %arg0, %c0_i32, %c0_i32_0 : i32, i32, i32
  }
  func.func @transform_2(%arg0: i32) -> (i32, i32) {
    %c0_i32 = arith.constant 0 : i32
    %c0_i32_0 = arith.constant 0 : i32
    %c0_i32_1 = arith.constant 0 : i32
    return %c0_i32, %c0_i32_0 : i32, i32
  }
  func.func @transform_3(%arg0: i32) -> (i32, i32) {
    %c0_i32 = arith.constant 0 : i32
    %c0_i32_0 = arith.constant 0 : i32
    %c0_i32_1 = arith.constant 0 : i32
    return %c0_i32, %c0_i32_0 : i32, i32
  }
  func.func @transform_4(%arg0: i32) -> (i32, i32) {
    %c0_i32 = arith.constant 0 : i32
    %c0_i32_0 = arith.constant 0 : i32
    %c0_i32_1 = arith.constant 0 : i32
    return %c0_i32, %c0_i32_0 : i32, i32
  }
  func.func @transform_5(%arg0: i32) -> (i32, i32) {
    %c0_i32 = arith.constant 0 : i32
    %c0_i32_0 = arith.constant 0 : i32
    return %arg0, %c0_i32 : i32, i32
  }
}

</mosaic_0001>

<bundles_post_ra>
// kernel: tpu_custom_call.1
= control target key start
LH: loop header
LB: loop body
LE: loop exit
PB: predicated region body
PF: predicated region fallthrough
CT: control target
= control target key end

     0   :  { %10 = vsyncpa [#allocation3], 0  ;;  %s4134_s0 = inlined_call_operand.hbm [shape: f32[8,145], index: 0, kind: input, shape index: {}]   ;;  %s4135_s1 = inlined_call_operand.vmem [shape: f32[1,128,16], index: 1, kind: input, shape index: {}]   ;;  %s4136_s2 = inlined_call_operand.vmem [shape: f32[1,3072], index: 2, kind: input, shape index: {}]   ;;  %s4137_s3 = inlined_call_operand.hbm [shape: bf16[145,3072], index: 3, kind: input, shape index: {}]   ;;  %s4138_s4 = inlined_call_operand.vmem [shape: f32[16,1024], index: 4, kind: input, shape index: {}]   ;;  %s4139_s5 = inlined_call_operand.hbm [shape: f32[8,3072], index: 5, kind: output, shape index: {}]  }
   0x1   :  { %11 = vsyncpa [#allocation6], 0 }
   0x2   :  { %12 = vsyncpa [#allocation4], 0  ;;  %s3429_s18 = smov [#allocation2]   ;;  %s3430_s20 = smov [#allocation5]  }
   0x3   :  { %s19_s19 = sshll.u32 %s3429_s18, 4  ;;  %s32_s21 = sshll.u32 %s3430_s20, 4  ;;  %s20_s19 = int_to_ptr.vmem [resolvable:$true] %s19_s19  ;;  %s3466_s21 = int_to_ptr.vmem [resolvable:$true] %s32_s21 }
   0x4   :  { %s3357_s24 = scalar_lea.hbm %s4134_s0, 256 }
   0x5   :  { %p3358_p0 = scmp.ne.s32.totalorder %s4134_s0, %s3357_s24  ;;  %p3361_p1 = scmp.lt.u32.totalorder %s3357_s24, %s4134_s0 }
   0x7   :  { %p3363_p2 = pnand %p3361_p1, %p3358_p0 }
   0x9   :  { %3366 = shalt.err (!%p3363_p2)
}
   0xa   :  { %s3367_s29 = scalar_lea.vmem %s20_s19, 256  ;;  %p3372_p4 = scmp.lt.s32.totalorder %s20_s19, %s20_s19 }
   0xb   :  { %p3368_p3 = scmp.ne.s32.totalorder %s20_s19, %s3367_s29  ;;  %p3373_p5 = scmp.lt.s32.totalorder %s3367_s29, %s3367_s29 }
   0xd   :  { %p3374_p6 = por %p3373_p5, %p3372_p4 }
   0xf   :  { %p3375_p7 = pnand %p3374_p6, %p3368_p3 }
  0x11   :  { %3378 = shalt.err (!%p3375_p7)
}
  0x12   :  { %22 = dma.hbm_to_vmem [thread:$0]  %s4134_s0, 256, %s20_s19, [#allocation3]  }
  0x13   :  { %s3379_s9 = scalar_lea.hbm %s4137_s3, 29184 }
  0x14   :  { %p3380_p8 = scmp.ne.s32.totalorder %s4137_s3, %s3379_s9  ;;  %p3383_p9 = scmp.lt.u32.totalorder %s3379_s9, %s4137_s3 }
  0x16   :  { %p3385_p10 = pnand %p3383_p9, %p3380_p8 }
  0x18   :  { %3388 = shalt.err (!%p3385_p10)
}
  0x19   :  { %s3389_s14 = scalar_lea.vmem %s3466_s21, 29184  ;;  %p3394_p12 = scmp.lt.s32.totalorder %s3466_s21, %s3466_s21 }
  0x1a   :  { %p3390_p11 = scmp.ne.s32.totalorder %s3466_s21, %s3389_s14  ;;  %p3395_p13 = scmp.lt.s32.totalorder %s3389_s14, %s3389_s14 }
  0x1c   :  { %p3396_p0 = por %p3395_p13, %p3394_p12 }
  0x1e   :  { %p3397_p1 = pnand %p3396_p0, %p3390_p11 }
  0x20   :  { %3400 = shalt.err (!%p3397_p1)
}
  0x21   :  { %s3431_s0 = smov 1536   ;;  %s3432_s15 = smov 96  }
  0x22   :  { %38 = dma.hbm_to_vmem [thread:$0]  %s4137_s3, 29184, %s3466_s21, [#allocation6], %s3431_s0, %s3431_s0, %s3432_s15  }
  0x23   :  { %3423 = dma.done.wait [#allocation3], 256  }
  0x24   :  { %3424 = vsyncadd [#allocation3], 4294967040 }
  0x25   :  { %3425 = dma.done.wait [#allocation6], 29184  }
  0x26   :  { %3426 = vsyncadd [#allocation6], 4294938112  ;;  %v52_v0 = vld [vmem:[#allocation5] sm:$0xff]  ;;  %v53_v2 = vld [vmem:[#allocation5 + $0x8] sm:$0xff]  ;;  %vm1546_vm0 = vcmask 138240   ;;  %vm1550_vm1 = vcmask 1040384  }
  0x27   :  { %v64_v1 = vld [vmem:[#allocation5 + $0x60] sm:$0xff]  ;;  %v65_v4 = vld [vmem:[#allocation5 + $0x68] sm:$0xff]  ;;  %v49_v35 = vld [vmem:[#allocation2 + $0x8] sm:$0xff]  ;;  %vm2149_vm2 = vcmask 130048  }
  0x28   :  { %v2995_v3 = vcombine.high %v52_v0, %v64_v1  ;;  %v2994_v5 = vcombine.low %v52_v0, %v64_v1  ;;  %v76_v6 = vld [vmem:[#allocation5 + $0xc0] sm:$0xff]  ;;  %v2997_v8 = vcombine.high %v53_v2, %v65_v4  ;;  %v2996_v9 = vcombine.low %v53_v2, %v65_v4  ;;  %v77_v11 = vld [vmem:[#allocation5 + $0xc8] sm:$0xff] }
  0x29   :  { %v88_v7 = vld [vmem:[#allocation5 + $0x120] sm:$0xff]  ;;  %v89_v12 = vld [vmem:[#allocation5 + $0x128] sm:$0xff]  ;;  %v3497_v41 = vpack.c.bf16 %v49_v35, %v49_v35 }
  0x2a   :  { %v3019_v10 = vcombine.high %v76_v6, %v88_v7  ;;  %v100_v13 = vld [vmem:[#allocation5 + $0x180] sm:$0xff]  ;;  %1625 = vmatprep.subr.bf16.mxu0 %v2995_v3  ;;  %v3021_v14 = vcombine.high %v77_v11, %v89_v12  ;;  %v101_v16 = vld [vmem:[#allocation5 + $0x188] sm:$0xff]  ;;  %1666 = vmatprep.subr.bf16.mxu1 %v2997_v8  ;;  %v3018_v18 = vcombine.low %v76_v6, %v88_v7 }
  0x2b   :  { %v112_v15 = vld [vmem:[#allocation5 + $0x1e0] sm:$0xff]  ;;  %v113_v17 = vld [vmem:[#allocation5 + $0x1e8] sm:$0xff]  ;;  %1626 = vmatpush1.bf16.msra.mxu0 %v2994_v5  ;;  %1667 = vmatpush1.bf16.msra.mxu1 %v2996_v9  ;;  %v3020_v19 = vcombine.low %v77_v11, %v89_v12  ;;  %v3433_v11 = vmov 0  }
  0x2c   :  { %1627 = vmatprep.subr.bf16.mxu0 %v3019_v10  ;;  %v3043_v20 = vcombine.high %v100_v13, %v112_v15  ;;  %1668 = vmatprep.subr.bf16.mxu1 %v3021_v14  ;;  %v3045_v21 = vcombine.high %v101_v16, %v113_v17  ;;  %v124_v22 = vld [vmem:[#allocation5 + $0x240] sm:$0xff]  ;;  %v125_v24 = vld [vmem:[#allocation5 + $0x248] sm:$0xff]  ;;  %v3042_v26 = vcombine.low %v100_v13, %v112_v15  ;;  %v3503_v12 = vsel %vm1550_vm1, 65535, %v3433_v11 }
  0x2d   :  { %v136_v23 = vld [vmem:[#allocation5 + $0x2a0] sm:$0xff]  ;;  %v137_v25 = vld [vmem:[#allocation5 + $0x2a8] sm:$0xff]  ;;  %v3044_v27 = vcombine.low %v101_v16, %v113_v17  ;;  %3234 = vmatprep.mubr.msk.bf16.mxu0 %vm1546_vm0, %v3497_v41  ;;  %3235 = vmatprep.mubr.msk.bf16.mxu1 %vm1546_vm0, %v3497_v41 }
  0x2e   :  { %v3067_v28 = vcombine.high %v124_v22, %v136_v23  ;;  %v3069_v29 = vcombine.high %v125_v24, %v137_v25  ;;  %v148_v30 = vld [vmem:[#allocation5 + $0x300] sm:$0xff]  ;;  %v149_v32 = vld [vmem:[#allocation5 + $0x308] sm:$0xff]  ;;  %v3066_v34 = vcombine.low %v124_v22, %v136_v23  ;;  %v3068_v36 = vcombine.low %v125_v24, %v137_v25  ;;  %v55_v22 = vld [vmem:[#allocation5 + $0x18] sm:$0xff] }
  0x2f   :  { %1628 = vmatpush1.bf16.msra.mxu0 %v3018_v18  ;;  %1669 = vmatpush1.bf16.msra.mxu1 %v3020_v19  ;;  %v160_v31 = vld [vmem:[#allocation5 + $0x360] sm:$0xff]  ;;  %v161_v33 = vld [vmem:[#allocation5 + $0x368] sm:$0xff]  ;;  %v67_v23 = vld [vmem:[#allocation5 + $0x78] sm:$0xff] }
  0x30   :  { %1629 = vmatprep.subr.bf16.mxu0 %v3043_v20  ;;  %1670 = vmatprep.subr.bf16.mxu1 %v3045_v21  ;;  %v3091_v37 = vcombine.high %v148_v30, %v160_v31  ;;  %v3093_v38 = vcombine.high %v149_v32, %v161_v33  ;;  %v172_v39 = vld [vmem:[#allocation5 + $0x3c0] sm:$0xff]  ;;  %v173_v42 = vld [vmem:[#allocation5 + $0x3c8] sm:$0xff]  ;;  %v3090_v44 = vcombine.low %v148_v30, %v160_v31  ;;  %v54_v20 = vld [vmem:[#allocation5 + $0x10] sm:$0xff] }
  0x31   :  { %v184_v40 = vld [vmem:[#allocation5 + $0x420] sm:$0xff]  ;;  %v185_v43 = vld [vmem:[#allocation5 + $0x428] sm:$0xff]  ;;  %v3092_v45 = vcombine.low %v149_v32, %v161_v33  ;;  %v66_v21 = vld [vmem:[#allocation5 + $0x70] sm:$0xff]  ;;  %v3000_v35 = vcombine.low %v55_v22, %v67_v23 }
  0x32   :  { %v3115_v46 = vcombine.high %v172_v39, %v184_v40  ;;  %v3117_v47 = vcombine.high %v173_v42, %v185_v43  ;;  %v196_v48 = vld [vmem:[#allocation5 + $0x480] sm:$0xff]  ;;  %v197_v50 = vld [vmem:[#allocation5 + $0x488] sm:$0xff]  ;;  %v3114_v52 = vcombine.low %v172_v39, %v184_v40  ;;  %v3116_v53 = vcombine.low %v173_v42, %v185_v43  ;;  %v48_v25 = vld [vmem:[#allocation2] sm:$0xff] }
  0x33   :  { %1630 = vmatpush1.bf16.msra.mxu0 %v3042_v26  ;;  %1671 = vmatpush1.bf16.msra.mxu1 %v3044_v27  ;;  %v208_v49 = vld [vmem:[#allocation5 + $0x4e0] sm:$0xff]  ;;  %v209_v51 = vld [vmem:[#allocation5 + $0x4e8] sm:$0xff]  ;;  %v2999_v27 = vcombine.high %v54_v20, %v66_v21  ;;  %v90_v30 = vld [vmem:[#allocation5 + $0x130] sm:$0xff]  ;;  %v3509_v31 = vpack.c.bf16 %v48_v25, %v48_v25 }
  0x34   :  { %1631 = vmatprep.subr.bf16.mxu0 %v3067_v28  ;;  %1672 = vmatprep.subr.bf16.mxu1 %v3069_v29  ;;  %v3139_v54 = vcombine.high %v196_v48, %v208_v49  ;;  %v3141_v55 = vcombine.high %v197_v50, %v209_v51  ;;  %v220_v56 = vld [vmem:[#allocation5 + $0x540] sm:$0xff]  ;;  %v221_v58 = vld [vmem:[#allocation5 + $0x548] sm:$0xff]  ;;  %v3138_v60 = vcombine.low %v196_v48, %v208_v49  ;;  %v78_v29 = vld [vmem:[#allocation5 + $0xd0] sm:$0xff] }
  0x35   :  { %v232_v57 = vld [vmem:[#allocation5 + $0x5a0] sm:$0xff]  ;;  %v233_v59 = vld [vmem:[#allocation5 + $0x5a8] sm:$0xff]  ;;  %v3140_v61 = vcombine.low %v197_v50, %v209_v51  ;;  %v3001_v28 = vcombine.high %v55_v22, %v67_v23  ;;  %v79_v32 = vld [vmem:[#allocation5 + $0xd8] sm:$0xff]  ;;  %v3022_v43 = vcombine.low %v78_v29, %v90_v30 }
  0x36   :  { %v3163_v62 = vcombine.high %v220_v56, %v232_v57  ;;  %v3165_v63 = vcombine.high %v221_v58, %v233_v59  ;;  %v244_v0 = vld [vmem:[#allocation5 + $0x600] sm:$0xff]  ;;  %v245_v3 = vld [vmem:[#allocation5 + $0x608] sm:$0xff]  ;;  %v3162_v6 = vcombine.low %v220_v56, %v232_v57  ;;  %v3164_v7 = vcombine.low %v221_v58, %v233_v59  ;;  %v91_v33 = vld [vmem:[#allocation5 + $0x138] sm:$0xff] }
  0x37   :  { %1632 = vmatpush1.bf16.msra.mxu0 %v3066_v34  ;;  %1673 = vmatpush1.bf16.msra.mxu1 %v3068_v36  ;;  %v256_v1 = vld [vmem:[#allocation5 + $0x660] sm:$0xff]  ;;  %v257_v4 = vld [vmem:[#allocation5 + $0x668] sm:$0xff]  ;;  %v2998_v34 = vcombine.low %v54_v20, %v66_v21  ;;  %v3023_v36 = vcombine.high %v78_v29, %v90_v30  ;;  %v114_v39 = vld [vmem:[#allocation5 + $0x1f0] sm:$0xff] }
  0x38   :  { %1633 = vmatprep.subr.bf16.mxu0 %v3091_v37  ;;  %1674 = vmatprep.subr.bf16.mxu1 %v3093_v38  ;;  %v268_v2 = vld [vmem:[#allocation5 + $0x6c0] sm:$0x11]  ;;  %v269_v5 = vld [vmem:[#allocation5 + $0x6c8] sm:$0x11]  ;;  %v3187_v8 = vcombine.high %v244_v0, %v256_v1  ;;  %v3189_v10 = vcombine.high %v245_v3, %v257_v4  ;;  %v3186_v14 = vcombine.low %v244_v0, %v256_v1  ;;  %v102_v38 = vld [vmem:[#allocation5 + $0x190] sm:$0xff] }
  0x39   :  { %v3211_v9 = vcombine.high %v268_v2, %v268_v2  ;;  %v3213_v13 = vcombine.high %v269_v5, %v269_v5  ;;  %v3210_v15 = vcombine.low %v268_v2, %v268_v2  ;;  %v3188_v16 = vcombine.low %v245_v3, %v257_v4  ;;  %v103_v40 = vld [vmem:[#allocation5 + $0x198] sm:$0xff]  ;;  %v138_v48 = vld [vmem:[#allocation5 + $0x2b0] sm:$0xff] }
  0x3a   :  { %v3212_v18 = vcombine.low %v269_v5, %v269_v5  ;;  %v3025_v37 = vcombine.high %v79_v32, %v91_v33  ;;  %v115_v42 = vld [vmem:[#allocation5 + $0x1f8] sm:$0xff]  ;;  %v3046_v51 = vcombine.low %v102_v38, %v114_v39  ;;  %v162_v56 = vld [vmem:[#allocation5 + $0x370] sm:$0xff] }
  0x3b   :  { %1634 = vmatpush1.bf16.msra.mxu0 %v3090_v44  ;;  %1675 = vmatpush1.bf16.msra.mxu1 %v3092_v45  ;;  %v1557_v17 = vand.u32 %v3211_v9, %v3503_v12  ;;  %v1563_v19 = vand.u32 %v3213_v13, %v3503_v12  ;;  %v1554_v24 = vand.u32 %v3210_v15, %v3503_v12  ;;  %v127_v49 = vld [vmem:[#allocation5 + $0x258] sm:$0xff]  ;;  %v186_v0 = vld [vmem:[#allocation5 + $0x430] sm:$0xff] }
  0x3c   :  { %1635 = vmatprep.subr.bf16.mxu0 %v3115_v46  ;;  %1676 = vmatprep.subr.bf16.mxu1 %v3117_v47  ;;  %v1560_v26 = vand.u32 %v3212_v18, %v3503_v12  ;;  %v3024_v44 = vcombine.low %v79_v32, %v91_v33  ;;  %v3047_v45 = vcombine.high %v102_v38, %v114_v39  ;;  %v126_v47 = vld [vmem:[#allocation5 + $0x250] sm:$0xff]  ;;  %v139_v50 = vld [vmem:[#allocation5 + $0x2b8] sm:$0xff] }
  0x3d   :  { %v3049_v46 = vcombine.high %v103_v40, %v115_v42  ;;  %v151_v57 = vld [vmem:[#allocation5 + $0x318] sm:$0xff]  ;;  %v3070_v59 = vcombine.low %v126_v47, %v138_v48  ;;  %v258_v25 = vld [vmem:[#allocation5 + $0x670] sm:$0xff] }
  0x3e   :  { %v163_v58 = vld [vmem:[#allocation5 + $0x378] sm:$0xff] }
  0x3f   :  { %1636 = vmatpush1.bf16.msra.mxu0 %v3114_v52  ;;  %1677 = vmatpush1.bf16.msra.mxu1 %v3116_v53  ;;  %v3048_v52 = vcombine.low %v103_v40, %v115_v42  ;;  %v3071_v53 = vcombine.high %v126_v47, %v138_v48  ;;  %v175_v1 = vld [vmem:[#allocation5 + $0x3d8] sm:$0xff]  ;;  %v3096_v4 = vcombine.low %v151_v57, %v163_v58  ;;  %v69_v47 = vld [vmem:[#allocation5 + $0x88] sm:$0xff] }
  0x40   :  { %1637 = vmatprep.subr.bf16.mxu0 %v3139_v54  ;;  %1678 = vmatprep.subr.bf16.mxu1 %v3141_v55  ;;  %v3073_v54 = vcombine.high %v127_v49, %v139_v50  ;;  %v150_v55 = vld [vmem:[#allocation5 + $0x310] sm:$0xff]  ;;  %v187_v2 = vld [vmem:[#allocation5 + $0x438] sm:$0xff] }
  0x41   :  { %v3094_v3 = vcombine.low %v150_v55, %v162_v56  ;;  %v199_v9 = vld [vmem:[#allocation5 + $0x498] sm:$0xff]  ;;  %v3120_v13 = vcombine.low %v175_v1, %v187_v2 }
  0x42   :  { %v223_v18 = vld [vmem:[#allocation5 + $0x558] sm:$0xff] }
  0x43   :  { %1638 = vmatpush1.bf16.msra.mxu0 %v3138_v60  ;;  %1679 = vmatpush1.bf16.msra.mxu1 %v3140_v61  ;;  %v3072_v60 = vcombine.low %v127_v49, %v139_v50  ;;  %v3095_v61 = vcombine.high %v150_v55, %v162_v56  ;;  %v271_v29 = vld [vmem:[#allocation5 + $0x6d8] sm:$0x11]  ;;  %v93_v55 = vld [vmem:[#allocation5 + $0x148] sm:$0xff] }
  0x44   :  { %1639 = vmatprep.subr.bf16.mxu0 %v3163_v62  ;;  %1680 = vmatprep.subr.bf16.mxu1 %v3165_v63  ;;  %v3097_v62 = vcombine.high %v151_v57, %v163_v58  ;;  %v174_v63 = vld [vmem:[#allocation5 + $0x3d0] sm:$0xff]  ;;  %v3216_v42 = vcombine.low %v271_v29, %v271_v29 }
  0x45   :  { %v3119_v5 = vcombine.high %v174_v63, %v186_v0  ;;  %v3118_v11 = vcombine.low %v174_v63, %v186_v0  ;;  %v117_v63 = vld [vmem:[#allocation5 + $0x208] sm:$0xff] }
  0x46   :  { %v1572_v49 = vand.u32 %v3216_v42, %v3503_v12  ;;  %v237_v42 = vld [vmem:[#allocation5 + $0x5c8] sm:$0xff] }
  0x47   :  { %1640 = vmatpush1.bf16.msra.mxu0 %v3162_v6  ;;  %1681 = vmatpush1.bf16.msra.mxu1 %v3164_v7  ;;  %v3121_v6 = vcombine.high %v175_v1, %v187_v2  ;;  %v198_v7 = vld [vmem:[#allocation5 + $0x490] sm:$0xff] }
  0x48   :  { %1641 = vmatprep.subr.bf16.mxu0 %v3187_v8  ;;  %1682 = vmatprep.subr.bf16.mxu1 %v3189_v10  ;;  %v210_v8 = vld [vmem:[#allocation5 + $0x4f0] sm:$0xff]  ;;  %v211_v10 = vld [vmem:[#allocation5 + $0x4f8] sm:$0xff] }
  0x49   :  { %v3145_v15 = vcombine.high %v199_v9, %v211_v10  ;;  %v3142_v20 = vcombine.low %v198_v7, %v210_v8  ;;  %v3144_v21 = vcombine.low %v199_v9, %v211_v10 }
  0x4b   :  { %1642 = vmatpush1.bf16.msra.mxu0 %v3186_v14  ;;  %1683 = vmatpush1.bf16.msra.mxu1 %v3188_v16  ;;  %v3143_v14 = vcombine.high %v198_v7, %v210_v8  ;;  %v222_v16 = vld [vmem:[#allocation5 + $0x550] sm:$0xff]  ;;  %v141_v7 = vld [vmem:[#allocation5 + $0x2c8] sm:$0xff] }
  0x4c   :  { %1643 = vmatprep.subr.bf16.mxu0 %v1557_v17  ;;  %1684 = vmatprep.subr.bf16.mxu1 %v1563_v19  ;;  %v234_v17 = vld [vmem:[#allocation5 + $0x5b0] sm:$0xff]  ;;  %v235_v19 = vld [vmem:[#allocation5 + $0x5b8] sm:$0xff] }
  0x4d   :  { %v3167_v22 = vcombine.high %v222_v16, %v234_v17  ;;  %v3169_v23 = vcombine.high %v223_v18, %v235_v19  ;;  %v3166_v30 = vcombine.low %v222_v16, %v234_v17  ;;  %v3168_v32 = vcombine.low %v223_v18, %v235_v19  ;;  %v165_v16 = vld [vmem:[#allocation5 + $0x388] sm:$0xff] }
  0x4f   :  { %1644 = vmatpush1.bf16.msra.mxu0 %v1554_v24  ;;  %1685 = vmatpush1.bf16.msra.mxu1 %v1560_v26  ;;  %v246_v24 = vld [vmem:[#allocation5 + $0x610] sm:$0xff] }
  0x50   :  { %1707 = vmatprep.subr.bf16.mxu0 %v2999_v27  ;;  %1748 = vmatprep.subr.bf16.mxu1 %v3001_v28  ;;  %v270_v26 = vld [vmem:[#allocation5 + $0x6d0] sm:$0x11]  ;;  %v247_v27 = vld [vmem:[#allocation5 + $0x618] sm:$0xff]  ;;  %v3191_v33 = vcombine.high %v246_v24, %v258_v25 }
  0x51   :  { %v259_v28 = vld [vmem:[#allocation5 + $0x678] sm:$0xff]  ;;  %v3214_v38 = vcombine.low %v270_v26, %v270_v26 }
  0x52   :  { %1658 = vmatmul.mubr.bf16.vlgmr.msra.gmra.mrb[0].mxu0 %v3509_v31  ;;  %1699 = vmatmul.mubr.bf16.vlgmr.msra.gmra.mrb[0].mxu1 %v3509_v31  ;;  %v3192_v39 = vcombine.low %v247_v27, %v259_v28 }
  0x53   :  { %1708 = vmatpush1.bf16.msra.mxu0 %v2998_v34  ;;  %1749 = vmatpush1.bf16.msra.mxu1 %v3000_v35  ;;  %v3215_v34 = vcombine.high %v270_v26, %v270_v26  ;;  %v3193_v35 = vcombine.high %v247_v27, %v259_v28  ;;  %v1566_v48 = vand.u32 %v3214_v38, %v3503_v12  ;;  %v224_v38 = vld [vmem:[#allocation5 + $0x560] sm:$0xff] }
  0x54   :  { %1709 = vmatprep.subr.bf16.mxu0 %v3023_v36  ;;  %1750 = vmatprep.subr.bf16.mxu1 %v3025_v37  ;;  %v3217_v36 = vcombine.high %v271_v29, %v271_v29  ;;  %v3190_v37 = vcombine.low %v246_v24, %v258_v25  ;;  %v189_v24 = vld [vmem:[#allocation5 + $0x448] sm:$0xff]  ;;  %v200_v29 = vld [vmem:[#allocation5 + $0x4a0] sm:$0xff] }
  0x55   :  { %3236 = vmatprep.mubr.msk.bf16.mxu0 %vm1546_vm0, %v3497_v41  ;;  %3237 = vmatprep.mubr.msk.bf16.mxu1 %vm1546_vm0, %v3497_v41  ;;  %v1569_v40 = vand.u32 %v3215_v34, %v3503_v12 }
  0x57   :  { %1710 = vmatpush1.bf16.msra.mxu0 %v3022_v43  ;;  %1751 = vmatpush1.bf16.msra.mxu1 %v3024_v44  ;;  %v1575_v43 = vand.u32 %v3217_v36, %v3503_v12  ;;  %v56_v44 = vld [vmem:[#allocation5 + $0x20] sm:$0xff] }
  0x58   :  { %1711 = vmatprep.subr.bf16.mxu0 %v3047_v45  ;;  %1752 = vmatprep.subr.bf16.mxu1 %v3049_v46  ;;  %v68_v45 = vld [vmem:[#allocation5 + $0x80] sm:$0xff]  ;;  %v57_v46 = vld [vmem:[#allocation5 + $0x28] sm:$0xff] }
  0x59   :  { %v3003_v50 = vcombine.high %v56_v44, %v68_v45  ;;  %v3002_v56 = vcombine.low %v56_v44, %v68_v45  ;;  %v3004_v57 = vcombine.low %v57_v46, %v69_v47 }
  0x5b   :  { %1712 = vmatpush1.bf16.msra.mxu0 %v3046_v51  ;;  %1753 = vmatpush1.bf16.msra.mxu1 %v3048_v52  ;;  %v3005_v51 = vcombine.high %v57_v46, %v69_v47  ;;  %v80_v52 = vld [vmem:[#allocation5 + $0xe0] sm:$0xff] }
  0x5c   :  { %1713 = vmatprep.subr.bf16.mxu0 %v3071_v53  ;;  %1754 = vmatprep.subr.bf16.mxu1 %v3073_v54  ;;  %v92_v53 = vld [vmem:[#allocation5 + $0x140] sm:$0xff]  ;;  %v81_v54 = vld [vmem:[#allocation5 + $0xe8] sm:$0xff] }
  0x5d   :  { %v3027_v58 = vcombine.high %v80_v52, %v92_v53  ;;  %v3026_v0 = vcombine.low %v80_v52, %v92_v53  ;;  %v3028_v1 = vcombine.low %v81_v54, %v93_v55  ;;  %v248_v47 = vld [vmem:[#allocation5 + $0x620] sm:$0xff]  ;;  %v273_v52 = vld [vmem:[#allocation5 + $0x6e8] sm:$0x11] }
  0x5f   :  { %1714 = vmatpush1.bf16.msra.mxu0 %v3070_v59  ;;  %1755 = vmatpush1.bf16.msra.mxu1 %v3072_v60  ;;  %v3029_v59 = vcombine.high %v81_v54, %v93_v55  ;;  %v104_v60 = vld [vmem:[#allocation5 + $0x1a0] sm:$0xff] }
  0x60   :  { %1715 = vmatprep.subr.bf16.mxu0 %v3095_v61  ;;  %1756 = vmatprep.subr.bf16.mxu1 %v3097_v62  ;;  %v116_v61 = vld [vmem:[#allocation5 + $0x200] sm:$0xff]  ;;  %v105_v62 = vld [vmem:[#allocation5 + $0x1a8] sm:$0xff] }
  0x61   :  { %v3051_v2 = vcombine.high %v104_v60, %v116_v61  ;;  %v3050_v8 = vcombine.low %v104_v60, %v116_v61  ;;  %v3052_v9 = vcombine.low %v105_v62, %v117_v63 }
  0x63   :  { %1716 = vmatpush1.bf16.msra.mxu0 %v3094_v3  ;;  %1757 = vmatpush1.bf16.msra.mxu1 %v3096_v4  ;;  %v3053_v3 = vcombine.high %v105_v62, %v117_v63  ;;  %v128_v4 = vld [vmem:[#allocation5 + $0x260] sm:$0xff]  ;;  %v3220_v63 = vcombine.low %v273_v52, %v273_v52 }
  0x64   :  { %1717 = vmatprep.subr.bf16.mxu0 %v3119_v5  ;;  %1758 = vmatprep.subr.bf16.mxu1 %v3121_v6  ;;  %v140_v5 = vld [vmem:[#allocation5 + $0x2c0] sm:$0xff]  ;;  %v129_v6 = vld [vmem:[#allocation5 + $0x268] sm:$0xff] }
  0x65   :  { %v3075_v10 = vcombine.high %v128_v4, %v140_v5  ;;  %v3074_v17 = vcombine.low %v128_v4, %v140_v5  ;;  %v3076_v18 = vcombine.low %v129_v6, %v141_v7  ;;  %v71_v4 = vld [vmem:[#allocation5 + $0x98] sm:$0xff] }
  0x67   :  { %1718 = vmatpush1.bf16.msra.mxu0 %v3118_v11  ;;  %1759 = vmatpush1.bf16.msra.mxu1 %v3120_v13  ;;  %v3077_v11 = vcombine.high %v129_v6, %v141_v7  ;;  %v152_v13 = vld [vmem:[#allocation5 + $0x320] sm:$0xff]  ;;  %v1584_v6 = vand.u32 %v3220_v63, %v3503_v12  ;;  %v239_v63 = vld [vmem:[#allocation5 + $0x5d8] sm:$0xff] }
  0x68   :  { %1719 = vmatprep.subr.bf16.mxu0 %v3143_v14  ;;  %1760 = vmatprep.subr.bf16.mxu1 %v3145_v15  ;;  %v164_v14 = vld [vmem:[#allocation5 + $0x380] sm:$0xff]  ;;  %v153_v15 = vld [vmem:[#allocation5 + $0x328] sm:$0xff] }
  0x69   :  { %v3099_v19 = vcombine.high %v152_v13, %v164_v14  ;;  %v3098_v25 = vcombine.low %v152_v13, %v164_v14  ;;  %v3100_v26 = vcombine.low %v153_v15, %v165_v16  ;;  %v95_v13 = vld [vmem:[#allocation5 + $0x158] sm:$0xff] }
  0x6b   :  { %1720 = vmatpush1.bf16.msra.mxu0 %v3142_v20  ;;  %1761 = vmatpush1.bf16.msra.mxu1 %v3144_v21  ;;  %v3101_v20 = vcombine.high %v153_v15, %v165_v16  ;;  %v176_v21 = vld [vmem:[#allocation5 + $0x3e0] sm:$0xff] }
  0x6c   :  { %1721 = vmatprep.subr.bf16.mxu0 %v3167_v22  ;;  %1762 = vmatprep.subr.bf16.mxu1 %v3169_v23  ;;  %v188_v22 = vld [vmem:[#allocation5 + $0x440] sm:$0xff]  ;;  %v177_v23 = vld [vmem:[#allocation5 + $0x3e8] sm:$0xff] }
  0x6d   :  { %v3123_v27 = vcombine.high %v176_v21, %v188_v22  ;;  %v3125_v28 = vcombine.high %v177_v23, %v189_v24  ;;  %v3122_v34 = vcombine.low %v176_v21, %v188_v22  ;;  %v119_v21 = vld [vmem:[#allocation5 + $0x218] sm:$0xff] }
  0x6f   :  { %1722 = vmatpush1.bf16.msra.mxu0 %v3166_v30  ;;  %1763 = vmatpush1.bf16.msra.mxu1 %v3168_v32  ;;  %v212_v30 = vld [vmem:[#allocation5 + $0x500] sm:$0xff]  ;;  %v201_v32 = vld [vmem:[#allocation5 + $0x4a8] sm:$0xff] }
  0x70   :  { %1723 = vmatprep.subr.bf16.mxu0 %v3191_v33  ;;  %1764 = vmatprep.subr.bf16.mxu1 %v3193_v35  ;;  %v213_v33 = vld [vmem:[#allocation5 + $0x508] sm:$0xff]  ;;  %v3124_v35 = vcombine.low %v177_v23, %v189_v24  ;;  %v3147_v36 = vcombine.high %v200_v29, %v212_v30 }
  0x71   :  { %v3148_v44 = vcombine.low %v201_v32, %v213_v33 }
  0x73   :  { %1724 = vmatpush1.bf16.msra.mxu0 %v3190_v37  ;;  %1765 = vmatpush1.bf16.msra.mxu1 %v3192_v39  ;;  %v3149_v37 = vcombine.high %v201_v32, %v213_v33  ;;  %v236_v39 = vld [vmem:[#allocation5 + $0x5c0] sm:$0xff] }
  0x74   :  { %1725 = vmatprep.subr.bf16.mxu0 %v1569_v40  ;;  %1766 = vmatprep.subr.bf16.mxu1 %v1575_v43  ;;  %v225_v40 = vld [vmem:[#allocation5 + $0x568] sm:$0xff]  ;;  %v3146_v43 = vcombine.low %v200_v29, %v212_v30  ;;  %v3171_v45 = vcombine.high %v224_v38, %v236_v39  ;;  %v3170_v53 = vcombine.low %v224_v38, %v236_v39  ;;  %v143_v29 = vld [vmem:[#allocation5 + $0x2d8] sm:$0xff] }
  0x75   :  { %v3173_v46 = vcombine.high %v225_v40, %v237_v42  ;;  %v3172_v54 = vcombine.low %v225_v40, %v237_v42  ;;  %v167_v38 = vld [vmem:[#allocation5 + $0x398] sm:$0xff] }
  0x77   :  { %1726 = vmatpush1.bf16.msra.mxu0 %v1566_v48  ;;  %1767 = vmatpush1.bf16.msra.mxu1 %v1572_v49  ;;  %v260_v48 = vld [vmem:[#allocation5 + $0x680] sm:$0xff] }
  0x78   :  { %1789 = vmatprep.subr.bf16.mxu0 %v3003_v50  ;;  %1830 = vmatprep.subr.bf16.mxu1 %v3005_v51  ;;  %v272_v49 = vld [vmem:[#allocation5 + $0x6e0] sm:$0x11]  ;;  %v249_v50 = vld [vmem:[#allocation5 + $0x628] sm:$0xff]  ;;  %v3195_v55 = vcombine.high %v248_v47, %v260_v48 }
  0x79   :  { %v261_v51 = vld [vmem:[#allocation5 + $0x688] sm:$0xff]  ;;  %v3218_v60 = vcombine.low %v272_v49, %v272_v49 }
  0x7a   :  { %1740 = vmatmul.mubr.bf16.vlgmr.msra.gmra.mrb[4].mxu0 %v3509_v31  ;;  %1781 = vmatmul.mubr.bf16.vlgmr.msra.gmra.mrb[4].mxu1 %v3509_v31  ;;  %v3196_v61 = vcombine.low %v249_v50, %v261_v51 }
  0x7b   :  { %1790 = vmatpush1.bf16.msra.mxu0 %v3002_v56  ;;  %1831 = vmatpush1.bf16.msra.mxu1 %v3004_v57  ;;  %v3219_v56 = vcombine.high %v272_v49, %v272_v49  ;;  %v3197_v57 = vcombine.high %v249_v50, %v261_v51  ;;  %v1578_v5 = vand.u32 %v3218_v60, %v3503_v12  ;;  %v226_v60 = vld [vmem:[#allocation5 + $0x570] sm:$0xff] }
  0x7c   :  { %1791 = vmatprep.subr.bf16.mxu0 %v3027_v58  ;;  %1832 = vmatprep.subr.bf16.mxu1 %v3029_v59  ;;  %v3221_v58 = vcombine.high %v273_v52, %v273_v52  ;;  %v3194_v59 = vcombine.low %v248_v47, %v260_v48  ;;  %v191_v47 = vld [vmem:[#allocation5 + $0x458] sm:$0xff]  ;;  %v202_v52 = vld [vmem:[#allocation5 + $0x4b0] sm:$0xff] }
  0x7d   :  { %3238 = vmatprep.mubr.msk.bf16.mxu0 %vm1546_vm0, %v3497_v41  ;;  %3239 = vmatprep.mubr.msk.bf16.mxu1 %vm1546_vm0, %v3497_v41  ;;  %v1581_v62 = vand.u32 %v3219_v56, %v3503_v12 }
  0x7f   :  { %1792 = vmatpush1.bf16.msra.mxu0 %v3026_v0  ;;  %1833 = vmatpush1.bf16.msra.mxu1 %v3028_v1  ;;  %v1587_v0 = vand.u32 %v3221_v58, %v3503_v12  ;;  %v58_v1 = vld [vmem:[#allocation5 + $0x30] sm:$0xff] }
  0x80   :  { %1793 = vmatprep.subr.bf16.mxu0 %v3051_v2  ;;  %1834 = vmatprep.subr.bf16.mxu1 %v3053_v3  ;;  %v70_v2 = vld [vmem:[#allocation5 + $0x90] sm:$0xff]  ;;  %v59_v3 = vld [vmem:[#allocation5 + $0x38] sm:$0xff] }
  0x81   :  { %v3007_v7 = vcombine.high %v58_v1, %v70_v2  ;;  %v3006_v14 = vcombine.low %v58_v1, %v70_v2  ;;  %v3008_v15 = vcombine.low %v59_v3, %v71_v4 }
  0x83   :  { %1794 = vmatpush1.bf16.msra.mxu0 %v3050_v8  ;;  %1835 = vmatpush1.bf16.msra.mxu1 %v3052_v9  ;;  %v3009_v8 = vcombine.high %v59_v3, %v71_v4  ;;  %v82_v9 = vld [vmem:[#allocation5 + $0xf0] sm:$0xff] }
  0x84   :  { %1795 = vmatprep.subr.bf16.mxu0 %v3075_v10  ;;  %1836 = vmatprep.subr.bf16.mxu1 %v3077_v11  ;;  %v94_v10 = vld [vmem:[#allocation5 + $0x150] sm:$0xff]  ;;  %v83_v11 = vld [vmem:[#allocation5 + $0xf8] sm:$0xff] }
  0x85   :  { %v3031_v16 = vcombine.high %v82_v9, %v94_v10  ;;  %v3030_v22 = vcombine.low %v82_v9, %v94_v10  ;;  %v3032_v23 = vcombine.low %v83_v11, %v95_v13  ;;  %v250_v4 = vld [vmem:[#allocation5 + $0x630] sm:$0xff]  ;;  %v275_v9 = vld [vmem:[#allocation5 + $0x6f8] sm:$0x11] }
  0x87   :  { %1796 = vmatpush1.bf16.msra.mxu0 %v3074_v17  ;;  %1837 = vmatpush1.bf16.msra.mxu1 %v3076_v18  ;;  %v3033_v17 = vcombine.high %v83_v11, %v95_v13  ;;  %v106_v18 = vld [vmem:[#allocation5 + $0x1b0] sm:$0xff] }
  0x88   :  { %1797 = vmatprep.subr.bf16.mxu0 %v3099_v19  ;;  %1838 = vmatprep.subr.bf16.mxu1 %v3101_v20  ;;  %v118_v19 = vld [vmem:[#allocation5 + $0x210] sm:$0xff]  ;;  %v107_v20 = vld [vmem:[#allocation5 + $0x1b8] sm:$0xff] }
  0x89   :  { %v3055_v24 = vcombine.high %v106_v18, %v118_v19  ;;  %v3054_v30 = vcombine.low %v106_v18, %v118_v19  ;;  %v3056_v32 = vcombine.low %v107_v20, %v119_v21 }
  0x8b   :  { %1798 = vmatpush1.bf16.msra.mxu0 %v3098_v25  ;;  %1839 = vmatpush1.bf16.msra.mxu1 %v3100_v26  ;;  %v3057_v25 = vcombine.high %v107_v20, %v119_v21  ;;  %v130_v26 = vld [vmem:[#allocation5 + $0x270] sm:$0xff]  ;;  %v3224_v21 = vcombine.low %v275_v9, %v275_v9 }
  0x8c   :  { %1799 = vmatprep.subr.bf16.mxu0 %v3123_v27  ;;  %1840 = vmatprep.subr.bf16.mxu1 %v3125_v28  ;;  %v142_v27 = vld [vmem:[#allocation5 + $0x2d0] sm:$0xff]  ;;  %v131_v28 = vld [vmem:[#allocation5 + $0x278] sm:$0xff] }
  0x8d   :  { %v3079_v33 = vcombine.high %v130_v26, %v142_v27  ;;  %v3078_v39 = vcombine.low %v130_v26, %v142_v27  ;;  %v3080_v40 = vcombine.low %v131_v28, %v143_v29  ;;  %v73_v26 = vld [vmem:[#allocation5 + $0xa8] sm:$0xff] }
  0x8f   :  { %1800 = vmatpush1.bf16.msra.mxu0 %v3122_v34  ;;  %1841 = vmatpush1.bf16.msra.mxu1 %v3124_v35  ;;  %v3081_v34 = vcombine.high %v131_v28, %v143_v29  ;;  %v154_v35 = vld [vmem:[#allocation5 + $0x330] sm:$0xff]  ;;  %v1596_v28 = vand.u32 %v3224_v21, %v3503_v12  ;;  %v204_v21 = vld [vmem:[#allocation5 + $0x4c0] sm:$0xff] }
  0x90   :  { %1801 = vmatprep.subr.bf16.mxu0 %v3147_v36  ;;  %1842 = vmatprep.subr.bf16.mxu1 %v3149_v37  ;;  %v166_v36 = vld [vmem:[#allocation5 + $0x390] sm:$0xff]  ;;  %v155_v37 = vld [vmem:[#allocation5 + $0x338] sm:$0xff] }
  0x91   :  { %v3103_v42 = vcombine.high %v154_v35, %v166_v36  ;;  %v3102_v48 = vcombine.low %v154_v35, %v166_v36  ;;  %v3104_v49 = vcombine.low %v155_v37, %v167_v38  ;;  %v85_v35 = vld [vmem:[#allocation5 + $0x108] sm:$0xff] }
  0x92   :  { %v97_v36 = vld [vmem:[#allocation5 + $0x168] sm:$0xff] }
  0x93   :  { %1802 = vmatpush1.bf16.msra.mxu0 %v3146_v43  ;;  %1843 = vmatpush1.bf16.msra.mxu1 %v3148_v44  ;;  %v3105_v43 = vcombine.high %v155_v37, %v167_v38  ;;  %v178_v44 = vld [vmem:[#allocation5 + $0x3f0] sm:$0xff] }
  0x94   :  { %1803 = vmatprep.subr.bf16.mxu0 %v3171_v45  ;;  %1844 = vmatprep.subr.bf16.mxu1 %v3173_v46  ;;  %v190_v45 = vld [vmem:[#allocation5 + $0x450] sm:$0xff]  ;;  %v179_v46 = vld [vmem:[#allocation5 + $0x3f8] sm:$0xff] }
  0x95   :  { %v3127_v50 = vcombine.high %v178_v44, %v190_v45  ;;  %v3129_v51 = vcombine.high %v179_v46, %v191_v47  ;;  %v3126_v56 = vcombine.low %v178_v44, %v190_v45  ;;  %v109_v45 = vld [vmem:[#allocation5 + $0x1c8] sm:$0xff] }
  0x97   :  { %1804 = vmatpush1.bf16.msra.mxu0 %v3170_v53  ;;  %1845 = vmatpush1.bf16.msra.mxu1 %v3172_v54  ;;  %v214_v53 = vld [vmem:[#allocation5 + $0x510] sm:$0xff]  ;;  %v203_v54 = vld [vmem:[#allocation5 + $0x4b8] sm:$0xff] }
  0x98   :  { %1805 = vmatprep.subr.bf16.mxu0 %v3195_v55  ;;  %1846 = vmatprep.subr.bf16.mxu1 %v3197_v57  ;;  %v215_v55 = vld [vmem:[#allocation5 + $0x518] sm:$0xff]  ;;  %v3128_v57 = vcombine.low %v179_v46, %v191_v47  ;;  %v3151_v58 = vcombine.high %v202_v52, %v214_v53  ;;  %v121_v46 = vld [vmem:[#allocation5 + $0x228] sm:$0xff] }
  0x99   :  { %v3152_v1 = vcombine.low %v203_v54, %v215_v55 }
  0x9b   :  { %1806 = vmatpush1.bf16.msra.mxu0 %v3194_v59  ;;  %1847 = vmatpush1.bf16.msra.mxu1 %v3196_v61  ;;  %v3153_v59 = vcombine.high %v203_v54, %v215_v55  ;;  %v238_v61 = vld [vmem:[#allocation5 + $0x5d0] sm:$0xff]  ;;  %v3061_v55 = vcombine.high %v109_v45, %v121_v46 }
  0x9c   :  { %1807 = vmatprep.subr.bf16.mxu0 %v1581_v62  ;;  %1848 = vmatprep.subr.bf16.mxu1 %v1587_v0  ;;  %v227_v62 = vld [vmem:[#allocation5 + $0x578] sm:$0xff]  ;;  %v3150_v0 = vcombine.low %v202_v52, %v214_v53  ;;  %v3175_v2 = vcombine.high %v226_v60, %v238_v61  ;;  %v3174_v10 = vcombine.low %v226_v60, %v238_v61  ;;  %v145_v60 = vld [vmem:[#allocation5 + $0x2e8] sm:$0xff] }
  0x9d   :  { %v3177_v3 = vcombine.high %v227_v62, %v239_v63  ;;  %v3176_v11 = vcombine.low %v227_v62, %v239_v63 }
  0x9f   :  { %1808 = vmatpush1.bf16.msra.mxu0 %v1578_v5  ;;  %1849 = vmatpush1.bf16.msra.mxu1 %v1584_v6  ;;  %v262_v5 = vld [vmem:[#allocation5 + $0x690] sm:$0xff] }
  0xa0   :  { %1871 = vmatprep.subr.bf16.mxu0 %v3007_v7  ;;  %1912 = vmatprep.subr.bf16.mxu1 %v3009_v8  ;;  %v274_v6 = vld [vmem:[#allocation5 + $0x6f0] sm:$0x11]  ;;  %v251_v7 = vld [vmem:[#allocation5 + $0x638] sm:$0xff]  ;;  %v3199_v13 = vcombine.high %v250_v4, %v262_v5 }
  0xa1   :  { %v263_v8 = vld [vmem:[#allocation5 + $0x698] sm:$0xff]  ;;  %v3222_v18 = vcombine.low %v274_v6, %v274_v6 }
  0xa2   :  { %1822 = vmatmul.mubr.bf16.vlgmr.msra.gmra.mrb[8].mxu0 %v3509_v31  ;;  %1863 = vmatmul.mubr.bf16.vlgmr.msra.gmra.mrb[8].mxu1 %v3509_v31  ;;  %v3200_v19 = vcombine.low %v251_v7, %v263_v8 }
  0xa3   :  { %1872 = vmatpush1.bf16.msra.mxu0 %v3006_v14  ;;  %1913 = vmatpush1.bf16.msra.mxu1 %v3008_v15  ;;  %v3223_v14 = vcombine.high %v274_v6, %v274_v6  ;;  %v3201_v15 = vcombine.high %v251_v7, %v263_v8  ;;  %v1590_v27 = vand.u32 %v3222_v18, %v3503_v12  ;;  %v157_v6 = vld [vmem:[#allocation5 + $0x348] sm:$0xff] }
  0xa4   :  { %1873 = vmatprep.subr.bf16.mxu0 %v3031_v16  ;;  %1914 = vmatprep.subr.bf16.mxu1 %v3033_v17  ;;  %v3225_v16 = vcombine.high %v275_v9, %v275_v9  ;;  %v3198_v17 = vcombine.low %v250_v4, %v262_v5  ;;  %v156_v4 = vld [vmem:[#allocation5 + $0x340] sm:$0xff]  ;;  %v169_v7 = vld [vmem:[#allocation5 + $0x3a8] sm:$0xff] }
  0xa5   :  { %3240 = vmatprep.mubr.msk.bf16.mxu0 %vm1546_vm0, %v3497_v41  ;;  %3241 = vmatprep.mubr.msk.bf16.mxu1 %vm1546_vm0, %v3497_v41  ;;  %v1593_v20 = vand.u32 %v3223_v14, %v3503_v12  ;;  %v168_v5 = vld [vmem:[#allocation5 + $0x3a0] sm:$0xff]  ;;  %v3108_v18 = vcombine.low %v157_v6, %v169_v7 }
  0xa6   :  { %v192_v14 = vld [vmem:[#allocation5 + $0x460] sm:$0xff] }
  0xa7   :  { %1874 = vmatpush1.bf16.msra.mxu0 %v3030_v22  ;;  %1915 = vmatpush1.bf16.msra.mxu1 %v3032_v23  ;;  %v1599_v22 = vand.u32 %v3225_v16, %v3503_v12  ;;  %v60_v23 = vld [vmem:[#allocation5 + $0x40] sm:$0xff]  ;;  %v193_v16 = vld [vmem:[#allocation5 + $0x468] sm:$0xff] }
  0xa8   :  { %1875 = vmatprep.subr.bf16.mxu0 %v3055_v24  ;;  %1916 = vmatprep.subr.bf16.mxu1 %v3057_v25  ;;  %v72_v24 = vld [vmem:[#allocation5 + $0xa0] sm:$0xff]  ;;  %v61_v25 = vld [vmem:[#allocation5 + $0x48] sm:$0xff] }
  0xa9   :  { %v3011_v29 = vcombine.high %v60_v23, %v72_v24  ;;  %v3010_v37 = vcombine.low %v60_v23, %v72_v24  ;;  %v3012_v38 = vcombine.low %v61_v25, %v73_v26  ;;  %v205_v23 = vld [vmem:[#allocation5 + $0x4c8] sm:$0xff] }
  0xaa   :  { %v217_v24 = vld [vmem:[#allocation5 + $0x528] sm:$0xff] }
  0xab   :  { %1876 = vmatpush1.bf16.msra.mxu0 %v3054_v30  ;;  %1917 = vmatpush1.bf16.msra.mxu1 %v3056_v32  ;;  %v3013_v30 = vcombine.high %v61_v25, %v73_v26  ;;  %v84_v32 = vld [vmem:[#allocation5 + $0x100] sm:$0xff] }
  0xac   :  { %1877 = vmatprep.subr.bf16.mxu0 %v3079_v33  ;;  %1918 = vmatprep.subr.bf16.mxu1 %v3081_v34  ;;  %v96_v33 = vld [vmem:[#allocation5 + $0x160] sm:$0xff]  ;;  %v286_v34 = vlaneseq }
  0xad   :  { %v3034_v47 = vcombine.low %v84_v32, %v96_v33 }
  0xae   :  { %v3541_v44 = vshrl.u32 %v286_v34, 7 }
  0xaf   :  { %1878 = vmatpush1.bf16.msra.mxu0 %v3078_v39  ;;  %1919 = vmatpush1.bf16.msra.mxu1 %v3080_v40  ;;  %v3035_v39 = vcombine.high %v84_v32, %v96_v33  ;;  %v3037_v40 = vcombine.high %v85_v35, %v97_v36  ;;  %v229_v32 = vld [vmem:[#allocation5 + $0x588] sm:$0xff] }
  0xb0   :  { %1879 = vmatprep.subr.bf16.mxu0 %v3103_v42  ;;  %1920 = vmatprep.subr.bf16.mxu1 %v3105_v43  ;;  %v108_v42 = vld [vmem:[#allocation5 + $0x1c0] sm:$0xff]  ;;  %v3554_v52 = vsub.s32 6, %v3541_v44  ;;  %v3557_v53 = vsub.s32 5, %v3541_v44  ;;  %v3560_v54 = vsub.s32 7, %v3541_v44  ;;  %v241_v33 = vld [vmem:[#allocation5 + $0x5e8] sm:$0xff] }
  0xb1   :  { %v120_v43 = vld [vmem:[#allocation5 + $0x220] sm:$0xff] }
  0xb3   :  { %1880 = vmatpush1.bf16.msra.mxu0 %v3102_v48  ;;  %1921 = vmatpush1.bf16.msra.mxu1 %v3104_v49  ;;  %v3036_v48 = vcombine.low %v85_v35, %v97_v36  ;;  %v3546_v49 = vsub.s32 4, %v3541_v44  ;;  %v3156_v35 = vcombine.low %v205_v23, %v217_v24 }
  0xb4   :  { %1881 = vmatprep.subr.bf16.mxu0 %v3127_v50  ;;  %1922 = vmatprep.subr.bf16.mxu1 %v3129_v51  ;;  %v3059_v50 = vcombine.high %v108_v42, %v120_v43  ;;  %v3551_v51 = vld [vmem:[%s4136_s2] sm:$0xff] }
  0xb5   :  { %v313_v61 = vrot.slane %v3551_v51, %v3554_v52  ;;  %v309_v62 = vrot.slane %v3551_v51, %v3557_v53  ;;  %v317_v63 = vrot.slane %v3551_v51, %v3560_v54 }
  0xb7   :  { %1882 = vmatpush1.bf16.msra.mxu0 %v3126_v56  ;;  %1923 = vmatpush1.bf16.msra.mxu1 %v3128_v57  ;;  %v132_v56 = vld [vmem:[#allocation5 + $0x280] sm:$0xff] }
  0xb8   :  { %1883 = vmatprep.subr.bf16.mxu0 %v3151_v58  ;;  %1924 = vmatprep.subr.bf16.mxu1 %v3153_v59  ;;  %v144_v57 = vld [vmem:[#allocation5 + $0x2e0] sm:$0xff]  ;;  %v305_v58 = vrot.slane %v3551_v51, %v3546_v49  ;;  %v133_v59 = vld [vmem:[#allocation5 + $0x288] sm:$0xff] }
  0xb9   :  { %v3082_v8 = vcombine.low %v132_v56, %v144_v57  ;;  %v3084_v9 = vcombine.low %v133_v59, %v145_v60 }
  0xbb   :  { %1884 = vmatpush1.bf16.msra.mxu0 %v3150_v0  ;;  %1925 = vmatpush1.bf16.msra.mxu1 %v3152_v1  ;;  %v3058_v0 = vcombine.low %v108_v42, %v120_v43  ;;  %v3060_v1 = vcombine.low %v109_v45, %v121_v46  ;;  %v253_v42 = vld [vmem:[#allocation5 + $0x648] sm:$0xff] }
  0xbc   :  { %1885 = vmatprep.subr.bf16.mxu0 %v3175_v2  ;;  %1926 = vmatprep.subr.bf16.mxu1 %v3177_v3  ;;  %v3083_v2 = vcombine.high %v132_v56, %v144_v57  ;;  %v3085_v3 = vcombine.high %v133_v59, %v145_v60  ;;  %v265_v43 = vld [vmem:[#allocation5 + $0x6a8] sm:$0xff] }
  0xbd   :  { %v277_v45 = vld [vmem:[#allocation5 + $0x708] sm:$0x11]  ;;  %v3204_v60 = vcombine.low %v253_v42, %v265_v43 }
  0xbe   :  { %v3229_v56 = vcombine.high %v277_v45, %v277_v45 }
  0xbf   :  { %1886 = vmatpush1.bf16.msra.mxu0 %v3174_v10  ;;  %1927 = vmatpush1.bf16.msra.mxu1 %v3176_v11  ;;  %v3107_v10 = vcombine.high %v156_v4, %v168_v5  ;;  %v3109_v11 = vcombine.high %v157_v6, %v169_v7  ;;  %v75_v6 = vld [vmem:[#allocation5 + $0xb8] sm:$0xff] }
  0xc0   :  { %1887 = vmatprep.subr.bf16.mxu0 %v3199_v13  ;;  %1928 = vmatprep.subr.bf16.mxu1 %v3201_v15  ;;  %v180_v13 = vld [vmem:[#allocation5 + $0x400] sm:$0xff]  ;;  %v181_v15 = vld [vmem:[#allocation5 + $0x408] sm:$0xff] }
  0xc1   :  { %v3130_v25 = vcombine.low %v180_v13, %v192_v14  ;;  %v3132_v26 = vcombine.low %v181_v15, %v193_v16 }
  0xc3   :  { %1888 = vmatpush1.bf16.msra.mxu0 %v3198_v17  ;;  %1929 = vmatpush1.bf16.msra.mxu1 %v3200_v19  ;;  %v3106_v17 = vcombine.low %v156_v4, %v168_v5  ;;  %v3131_v19 = vcombine.high %v180_v13, %v192_v14  ;;  %v74_v4 = vld [vmem:[#allocation5 + $0xb0] sm:$0xff]  ;;  %v63_v5 = vld [vmem:[#allocation5 + $0x58] sm:$0xff] }
  0xc4   :  { %1889 = vmatprep.subr.bf16.mxu0 %v1593_v20  ;;  %1930 = vmatprep.subr.bf16.mxu1 %v1599_v22  ;;  %v3133_v20 = vcombine.high %v181_v15, %v193_v16  ;;  %v216_v22 = vld [vmem:[#allocation5 + $0x520] sm:$0xff]  ;;  %v98_v13 = vld [vmem:[#allocation5 + $0x170] sm:$0xff]  ;;  %v87_v14 = vld [vmem:[#allocation5 + $0x118] sm:$0xff] }
  0xc5   :  { %v3154_v34 = vcombine.low %v204_v21, %v216_v22  ;;  %v99_v15 = vld [vmem:[#allocation5 + $0x178] sm:$0xff] }
  0xc7   :  { %1890 = vmatpush1.bf16.msra.mxu0 %v1590_v27  ;;  %1931 = vmatpush1.bf16.msra.mxu1 %v1596_v28  ;;  %v3155_v27 = vcombine.high %v204_v21, %v216_v22  ;;  %v3157_v28 = vcombine.high %v205_v23, %v217_v24  ;;  %v122_v21 = vld [vmem:[#allocation5 + $0x230] sm:$0xff]  ;;  %v111_v22 = vld [vmem:[#allocation5 + $0x1d8] sm:$0xff] }
  0xc8   :  { %1953 = vmatprep.subr.bf16.mxu0 %v3011_v29  ;;  %1994 = vmatprep.subr.bf16.mxu1 %v3013_v30  ;;  %v228_v29 = vld [vmem:[#allocation5 + $0x580] sm:$0xff]  ;;  %v123_v23 = vld [vmem:[#allocation5 + $0x238] sm:$0xff] }
  0xc9   :  { %v240_v30 = vld [vmem:[#allocation5 + $0x5e0] sm:$0xff] }
  0xca   :  { %1904 = vmatmul.mubr.bf16.vlgmr.msra.gmra.mrb[12].mxu0 %v3509_v31  ;;  %1945 = vmatmul.mubr.bf16.vlgmr.msra.gmra.mrb[12].mxu1 %v3509_v31  ;;  %v3179_v36 = vcombine.high %v228_v29, %v240_v30  ;;  %v3178_v46 = vcombine.low %v228_v29, %v240_v30  ;;  %v146_v29 = vld [vmem:[#allocation5 + $0x2f0] sm:$0xff]  ;;  %v135_v30 = vld [vmem:[#allocation5 + $0x298] sm:$0xff] }
  0xcb   :  { %1954 = vmatpush1.bf16.msra.mxu0 %v3010_v37  ;;  %1995 = vmatpush1.bf16.msra.mxu1 %v3012_v38  ;;  %v3181_v37 = vcombine.high %v229_v32, %v241_v33  ;;  %v252_v38 = vld [vmem:[#allocation5 + $0x640] sm:$0xff] }
  0xcc   :  { %1955 = vmatprep.subr.bf16.mxu0 %v3035_v39  ;;  %1996 = vmatprep.subr.bf16.mxu1 %v3037_v40  ;;  %v264_v39 = vld [vmem:[#allocation5 + $0x6a0] sm:$0xff] }
  0xcd   :  { %3242 = vmatprep.mubr.msk.bf16.mxu0 %vm1546_vm0, %v3497_v41  ;;  %3243 = vmatprep.mubr.msk.bf16.mxu1 %vm1546_vm0, %v3497_v41  ;;  %v276_v40 = vld [vmem:[#allocation5 + $0x700] sm:$0x11]  ;;  %v3202_v57 = vcombine.low %v252_v38, %v264_v39 }
  0xce   :  { %v3226_v59 = vcombine.low %v276_v40, %v276_v40 }
  0xcf   :  { %1956 = vmatpush1.bf16.msra.mxu0 %v3034_v47  ;;  %1997 = vmatpush1.bf16.msra.mxu1 %v3036_v48  ;;  %v3180_v47 = vcombine.low %v229_v32, %v241_v33  ;;  %v3203_v48 = vcombine.high %v252_v38, %v264_v39  ;;  %v147_v32 = vld [vmem:[#allocation5 + $0x2f8] sm:$0xff]  ;;  %v170_v38 = vld [vmem:[#allocation5 + $0x3b0] sm:$0xff] }
  0xd0   :  { %1957 = vmatprep.subr.bf16.mxu0 %v3059_v50  ;;  %1998 = vmatprep.subr.bf16.mxu1 %v3061_v55  ;;  %v3227_v50 = vcombine.high %v276_v40, %v276_v40  ;;  %v3205_v55 = vcombine.high %v253_v42, %v265_v43  ;;  %v1602_v7 = vand.u32 %v3226_v59, %v3503_v12  ;;  %v159_v39 = vld [vmem:[#allocation5 + $0x358] sm:$0xff] }
  0xd1   :  { %v171_v40 = vld [vmem:[#allocation5 + $0x3b8] sm:$0xff]  ;;  %v3088_v43 = vcombine.low %v135_v30, %v147_v32 }
  0xd3   :  { %1958 = vmatpush1.bf16.msra.mxu0 %v3058_v0  ;;  %1999 = vmatpush1.bf16.msra.mxu1 %v3060_v1  ;;  %v1605_v0 = vand.u32 %v3227_v50, %v3503_v12  ;;  %v3228_v1 = vcombine.low %v277_v45, %v277_v45  ;;  %v195_v50 = vld [vmem:[#allocation5 + $0x478] sm:$0xff] }
  0xd4   :  { %1959 = vmatprep.subr.bf16.mxu0 %v3083_v2  ;;  %2000 = vmatprep.subr.bf16.mxu1 %v3085_v3  ;;  %v1611_v2 = vand.u32 %v3229_v56, %v3503_v12  ;;  %v62_v3 = vld [vmem:[#allocation5 + $0x50] sm:$0xff]  ;;  %v3112_v56 = vcombine.low %v159_v39, %v171_v40 }
  0xd5   :  { %v3014_v16 = vcombine.low %v62_v3, %v74_v4 }
  0xd7   :  { %1960 = vmatpush1.bf16.msra.mxu0 %v3082_v8  ;;  %2001 = vmatpush1.bf16.msra.mxu1 %v3084_v9  ;;  %v1608_v8 = vand.u32 %v3228_v1, %v3503_v12  ;;  %v3015_v9 = vcombine.high %v62_v3, %v74_v4  ;;  %v207_v1 = vld [vmem:[#allocation5 + $0x4d8] sm:$0xff] }
  0xd8   :  { %1961 = vmatprep.subr.bf16.mxu0 %v3107_v10  ;;  %2002 = vmatprep.subr.bf16.mxu1 %v3109_v11  ;;  %v3017_v10 = vcombine.high %v63_v5, %v75_v6  ;;  %v86_v11 = vld [vmem:[#allocation5 + $0x110] sm:$0xff] }
  0xd9   :  { %v3038_v24 = vcombine.low %v86_v11, %v98_v13 }
  0xdb   :  { %1962 = vmatpush1.bf16.msra.mxu0 %v3106_v17  ;;  %2003 = vmatpush1.bf16.msra.mxu1 %v3108_v18  ;;  %v3016_v17 = vcombine.low %v63_v5, %v75_v6  ;;  %v3039_v18 = vcombine.high %v86_v11, %v98_v13 }
  0xdc   :  { %1963 = vmatprep.subr.bf16.mxu0 %v3131_v19  ;;  %2004 = vmatprep.subr.bf16.mxu1 %v3133_v20  ;;  %v3041_v19 = vcombine.high %v87_v14, %v99_v15  ;;  %v110_v20 = vld [vmem:[#allocation5 + $0x1d0] sm:$0xff] }
  0xdd   :  { %v3062_v33 = vcombine.low %v110_v20, %v122_v21 }
  0xdf   :  { %1964 = vmatpush1.bf16.msra.mxu0 %v3130_v25  ;;  %2005 = vmatpush1.bf16.msra.mxu1 %v3132_v26  ;;  %v3040_v25 = vcombine.low %v87_v14, %v99_v15  ;;  %v3063_v26 = vcombine.high %v110_v20, %v122_v21  ;;  %v267_v20 = vld [vmem:[#allocation5 + $0x6b8] sm:$0xff] }
  0xe0   :  { %1965 = vmatprep.subr.bf16.mxu0 %v3155_v27  ;;  %2006 = vmatprep.subr.bf16.mxu1 %v3157_v28  ;;  %v3065_v27 = vcombine.high %v111_v22, %v123_v23  ;;  %v134_v28 = vld [vmem:[#allocation5 + $0x290] sm:$0xff]  ;;  %v279_v21 = vld [vmem:[#allocation5 + $0x718] sm:$0x11] }
  0xe1   :  { %v3086_v42 = vcombine.low %v134_v28, %v146_v29 }
  0xe3   :  { %1966 = vmatpush1.bf16.msra.mxu0 %v3154_v34  ;;  %2007 = vmatpush1.bf16.msra.mxu1 %v3156_v35  ;;  %v3064_v34 = vcombine.low %v111_v22, %v123_v23  ;;  %v3087_v35 = vcombine.high %v134_v28, %v146_v29 }
  0xe4   :  { %1967 = vmatprep.subr.bf16.mxu0 %v3179_v36  ;;  %2008 = vmatprep.subr.bf16.mxu1 %v3181_v37  ;;  %v3089_v36 = vcombine.high %v135_v30, %v147_v32  ;;  %v158_v37 = vld [vmem:[#allocation5 + $0x350] sm:$0xff] }
  0xe5   :  { %v3111_v45 = vcombine.high %v158_v37, %v170_v38 }
  0xe7   :  { %1968 = vmatpush1.bf16.msra.mxu0 %v3178_v46  ;;  %2009 = vmatpush1.bf16.msra.mxu1 %v3180_v47  ;;  %v182_v46 = vld [vmem:[#allocation5 + $0x410] sm:$0xff] }
  0xe8   :  { %1969 = vmatprep.subr.bf16.mxu0 %v3203_v48  ;;  %2010 = vmatprep.subr.bf16.mxu1 %v3205_v55  ;;  %v194_v47 = vld [vmem:[#allocation5 + $0x470] sm:$0xff]  ;;  %v183_v48 = vld [vmem:[#allocation5 + $0x418] sm:$0xff]  ;;  %v3110_v55 = vcombine.low %v158_v37, %v170_v38  ;;  %v2136_v37 = vld [vmem:[%s4138_s4 + $0x18] sm:$0xff] }
  0xe9   :  { %v3137_v59 = vcombine.high %v183_v48, %v195_v50  ;;  %v3134_v3 = vcombine.low %v182_v46, %v194_v47  ;;  %v3136_v4 = vcombine.low %v183_v48, %v195_v50  ;;  %v2144_v38 = vld [vmem:[%s4138_s4 + $0x58] sm:$0xff]  ;;  %v2146_v48 = vld [vmem:[%s4138_s4 + $0x68] sm:$0xff] }
  0xeb   :  { %1970 = vmatpush1.bf16.msra.mxu0 %v3202_v57  ;;  %2011 = vmatpush1.bf16.msra.mxu1 %v3204_v60  ;;  %v3135_v57 = vcombine.high %v182_v46, %v194_v47  ;;  %v206_v60 = vld [vmem:[#allocation5 + $0x4d0] sm:$0xff]  ;;  %v2135_v46 = vld [vmem:[%s4138_s4 + $0x10] sm:$0xff] }
  0xec   :  { %1971 = vmatprep.subr.bf16.mxu0 %v1605_v0  ;;  %2012 = vmatprep.subr.bf16.mxu1 %v1611_v2  ;;  %v218_v0 = vld [vmem:[#allocation5 + $0x530] sm:$0xff]  ;;  %v219_v2 = vld [vmem:[#allocation5 + $0x538] sm:$0xff]  ;;  %v2143_v47 = vld [vmem:[%s4138_s4 + $0x50] sm:$0xff] }
  0xed   :  { %v3159_v5 = vcombine.high %v206_v60, %v218_v0  ;;  %v3161_v6 = vcombine.high %v207_v1, %v219_v2  ;;  %v3158_v11 = vcombine.low %v206_v60, %v218_v0  ;;  %v3160_v13 = vcombine.low %v207_v1, %v219_v2  ;;  %v3628_v0 = vld [vmem:[%s4136_s2 + $0x8] sm:$0xff] }
  0xee   :  { %v337_v1 = vrot.slane %v3628_v0, %v3546_v49  ;;  %v3434_v2 = vmov 0.0  }
  0xef   :  { %1972 = vmatpush1.bf16.msra.mxu0 %v1602_v7  ;;  %2013 = vmatpush1.bf16.msra.mxu1 %v1608_v8  ;;  %v230_v7 = vld [vmem:[#allocation5 + $0x590] sm:$0xff] }
  0xf0   :  { %2035 = vmatprep.subr.bf16.mxu0 %v3015_v9  ;;  %2076 = vmatprep.subr.bf16.mxu1 %v3017_v10  ;;  %v242_v8 = vld [vmem:[#allocation5 + $0x5f0] sm:$0xff]  ;;  %v231_v9 = vld [vmem:[#allocation5 + $0x598] sm:$0xff] }
  0xf1   :  { %v243_v10 = vld [vmem:[#allocation5 + $0x5f8] sm:$0xff]  ;;  %v3183_v14 = vcombine.high %v230_v7, %v242_v8  ;;  %v3182_v22 = vcombine.low %v230_v7, %v242_v8  ;;  %v341_v7 = vrot.slane %v3628_v0, %v3557_v53  ;;  %v349_v8 = vrot.slane %v3628_v0, %v3560_v54 }
  0xf2   :  { %1986 = vmatmul.mubr.bf16.vlgmr.msra.gmra.mrb[16].mxu0 %v3509_v31  ;;  %2027 = vmatmul.mubr.bf16.vlgmr.msra.gmra.mrb[16].mxu1 %v3509_v31  ;;  %v3185_v15 = vcombine.high %v231_v9, %v243_v10  ;;  %v3184_v23 = vcombine.low %v231_v9, %v243_v10  ;;  %v3656_v9 = vld [vmem:[%s4135_s1] sm:$0xff] }
  0xf3   :  { %2036 = vmatpush1.bf16.msra.mxu0 %v3014_v16  ;;  %2077 = vmatpush1.bf16.msra.mxu1 %v3016_v17  ;;  %v254_v16 = vld [vmem:[#allocation5 + $0x650] sm:$0xff] }
  0xf4   :  { %2037 = vmatprep.subr.bf16.mxu0 %v3039_v18  ;;  %2078 = vmatprep.subr.bf16.mxu1 %v3041_v19  ;;  %v266_v17 = vld [vmem:[#allocation5 + $0x6b0] sm:$0xff]  ;;  %v255_v19 = vld [vmem:[#allocation5 + $0x658] sm:$0xff] }
  0xf5   :  { %3244 = vmatprep.mubr.msk.bf16.mxu0 %vm1546_vm0, %v3497_v41  ;;  %3245 = vmatprep.mubr.msk.bf16.mxu1 %vm1546_vm0, %v3497_v41  ;;  %v3113_v41 = vcombine.high %v159_v39, %v171_v40  ;;  %v278_v18 = vld [vmem:[#allocation5 + $0x710] sm:$0x11]  ;;  %v3206_v28 = vcombine.low %v254_v16, %v266_v17  ;;  %v3208_v30 = vcombine.low %v255_v19, %v267_v20 }
  0xf6   :  { %v3230_v29 = vcombine.low %v278_v18, %v278_v18 }
  0xf7   :  { %2038 = vmatpush1.bf16.msra.mxu0 %v3038_v24  ;;  %2079 = vmatpush1.bf16.msra.mxu1 %v3040_v25  ;;  %v3207_v24 = vcombine.high %v254_v16, %v266_v17  ;;  %v3231_v25 = vcombine.high %v278_v18, %v278_v18 }
  0xf8   :  { %2039 = vmatprep.subr.bf16.mxu0 %v3063_v26  ;;  %2080 = vmatprep.subr.bf16.mxu1 %v3065_v27  ;;  %v3209_v26 = vcombine.high %v255_v19, %v267_v20  ;;  %v3233_v27 = vcombine.high %v279_v21, %v279_v21  ;;  %v1614_v39 = vand.u32 %v3230_v29, %v3503_v12  ;;  %v3685_v19 = vld [vmem:[%s4135_s1 + $0x10] sm:$0xff]  ;;  %v3762_v29 = vld [vmem:[%s4135_s1 + $0x48] sm:$0xff] }
  0xf9   :  { %v1617_v32 = vand.u32 %v3231_v25, %v3503_v12  ;;  %v3718_v25 = vld [vmem:[%s4135_s1 + $0x28] sm:$0xff] }
  0xfb   :  { %2040 = vmatpush1.bf16.msra.mxu0 %v3062_v33  ;;  %2081 = vmatpush1.bf16.msra.mxu1 %v3064_v34  ;;  %v3232_v33 = vcombine.low %v279_v21, %v279_v21  ;;  %v1623_v34 = vand.u32 %v3233_v27, %v3503_v12  ;;  %v3740_v27 = vld [vmem:[%s4135_s1 + $0x38] sm:$0xff] }
  0xfc   :  { %2041 = vmatprep.subr.bf16.mxu0 %v3087_v35  ;;  %2082 = vmatprep.subr.bf16.mxu1 %v3089_v36  ;;  %v2134_v35 = vld [vmem:[%s4138_s4 + $0x8] sm:$0xff] }
  0xfd   :  { %v2142_v36 = vld [vmem:[%s4138_s4 + $0x48] sm:$0xff]  ;;  %v1620_v40 = vand.u32 %v3232_v33, %v3503_v12 }
  0xfe   :  { %v2138_v12 = vld [vmem:[%s4138_s4 + $0x28] sm:$0xff] }
  0xff   :  { %2042 = vmatpush1.bf16.msra.mxu0 %v3086_v42  ;;  %2083 = vmatpush1.bf16.msra.mxu1 %v3088_v43  ;;  %v3310_v42 = vpack.c.bf16 %v2142_v36, %v2134_v35  ;;  %v2133_v43 = vld [vmem:[%s4138_s4] sm:$0xff] }
 0x100   :  { %2043 = vmatprep.subr.bf16.mxu0 %v3111_v45  ;;  %2084 = vmatprep.subr.bf16.mxu1 %v3113_v41  ;;  %v2141_v45 = vld [vmem:[%s4138_s4 + $0x40] sm:$0xff]  ;;  %v3314_v41 = vpack.c.bf16 %v2144_v38, %v2136_v37 }
 0x101   :  { %v3312_v50 = vpack.c.bf16 %v2141_v45, %v2133_v43  ;;  %v3826_v45 = vld [vmem:[%s4135_s1 + $0x68] sm:$0xff] }
 0x103   :  { %2044 = vmatpush1.bf16.msra.mxu0 %v3110_v55  ;;  %2085 = vmatpush1.bf16.msra.mxu1 %v3112_v56  ;;  %v2140_v55 = vld [vmem:[%s4138_s4 + $0x38] sm:$0xff] }
 0x104   :  { %2045 = vmatprep.subr.bf16.mxu0 %v3135_v57  ;;  %2086 = vmatprep.subr.bf16.mxu1 %v3137_v59  ;;  %v2148_v56 = vld [vmem:[%s4138_s4 + $0x78] sm:$0xff]  ;;  %v3316_v57 = vpack.c.bf16 %v2143_v47, %v2135_v46  ;;  %v3318_v59 = vpack.c.bf16 %v2146_v48, %v2138_v12 }
 0x105   :  { %v3322_v60 = vpack.c.bf16 %v2148_v56, %v2140_v55 }
 0x107   :  { %2046 = vmatpush1.bf16.msra.mxu0 %v3134_v3  ;;  %2087 = vmatpush1.bf16.msra.mxu1 %v3136_v4  ;;  %v2137_v3 = vld [vmem:[%s4138_s4 + $0x20] sm:$0xff] }
 0x108   :  { %2047 = vmatprep.subr.bf16.mxu0 %v3159_v5  ;;  %2088 = vmatprep.subr.bf16.mxu1 %v3161_v6  ;;  %v2145_v4 = vld [vmem:[%s4138_s4 + $0x60] sm:$0xff]  ;;  %v2147_v5 = vld [vmem:[%s4138_s4 + $0x70] sm:$0xff]  ;;  %v345_v6 = vrot.slane %v3628_v0, %v3554_v52 }
 0x109   :  { %v3320_v10 = vpack.c.bf16 %v2145_v4, %v2137_v3 }
 0x10b   :  { %2048 = vmatpush1.bf16.msra.mxu0 %v3158_v11  ;;  %2089 = vmatpush1.bf16.msra.mxu1 %v3160_v13  ;;  %v3665_v13 = vld [vmem:[%s4135_s1 + $0x8] sm:$0xff] }
 0x10c   :  { %2049 = vmatprep.subr.bf16.mxu0 %v3183_v14  ;;  %2090 = vmatprep.subr.bf16.mxu1 %v3185_v15 }
 0x10f   :  { %2050 = vmatpush1.bf16.msra.mxu0 %v3182_v22  ;;  %2091 = vmatpush1.bf16.msra.mxu1 %v3184_v23  ;;  %v3696_v23 = vld [vmem:[%s4135_s1 + $0x18] sm:$0xff] }
 0x110   :  { %2051 = vmatprep.subr.bf16.mxu0 %v3207_v24  ;;  %2092 = vmatprep.subr.bf16.mxu1 %v3209_v26  ;;  %v3707_v24 = vld [vmem:[%s4135_s1 + $0x20] sm:$0xff]  ;;  %v3729_v26 = vld [vmem:[%s4135_s1 + $0x30] sm:$0xff] }
 0x113   :  { %2052 = vmatpush1.bf16.msra.mxu0 %v3206_v28  ;;  %2093 = vmatpush1.bf16.msra.mxu1 %v3208_v30  ;;  %v3751_v28 = vld [vmem:[%s4135_s1 + $0x40] sm:$0xff]  ;;  %v3773_v30 = vld [vmem:[%s4135_s1 + $0x50] sm:$0xff] }
 0x114   :  { %2053 = vmatprep.subr.bf16.mxu0 %v1617_v32  ;;  %2094 = vmatprep.subr.bf16.mxu1 %v1623_v34  ;;  %v3784_v32 = vld [vmem:[%s4135_s1 + $0x58] sm:$0xff] }
 0x117   :  { %2054 = vmatpush1.bf16.msra.mxu0 %v1614_v39  ;;  %2095 = vmatpush1.bf16.msra.mxu1 %v1620_v40  ;;  %v3810_v40 = vld [vmem:[%s4135_s1 + $0x60] sm:$0xff] }
 0x118   :  { %3311 = vmatprep.subr.bf16.mxu0 %v3310_v42  ;;  %3315 = vmatprep.subr.bf16.mxu1 %v3314_v41  ;;  %v3848_v41 = vld [vmem:[%s4135_s1 + $0x78] sm:$0xff] }
 0x11a   :  { %2068 = vmatmul.mubr.bf16.vlgmr.msra.gmra.mrb[20].mxu0 %v3509_v31  ;;  %2109 = vmatmul.mubr.bf16.vlgmr.msra.gmra.mrb[20].mxu1 %v3509_v31  ;;  %v2139_v31 = vld [vmem:[%s4138_s4 + $0x30] sm:$0xff] }
 0x11b   :  { %3313 = vmatpush1.bf16.msra.mxu0 %v3312_v50  ;;  %3317 = vmatpush1.bf16.msra.mxu1 %v3316_v57  ;;  %v3324_v11 = vpack.c.bf16 %v2147_v5, %v2139_v31 }
 0x11c   :  { %2262 = vmatprep.mubr.f32.mxu0 %v3434_v2  ;;  %2415 = vmatprep.mubr.f32.mxu1 %v3434_v2 }
 0x11d   :  { %3319 = vmatprep.subr.bf16.mxu0 %v3318_v59  ;;  %3323 = vmatprep.subr.bf16.mxu1 %v3322_v60 }
 0x122   :  { %3246 = vmatmul.mubr.msk.f32.vlgmr.msra.gmra.mrb[24].mxu0 %vm2149_vm2, %v3656_v9  ;;  %3262 = vmatmul.mubr.msk.f32.vlgmr.msra.gmra.mrb[24].mxu1 %vm2149_vm2, %v3656_v9 }
 0x123   :  { %3321 = vmatpush1.bf16.msra.mxu0 %v3320_v10  ;;  %3325 = vmatpush1.bf16.msra.mxu1 %v3324_v11 }
 0x124   :  { %2268 = vmatprep.mubr.f32.mxu0 %v3434_v2  ;;  %2421 = vmatprep.mubr.f32.mxu1 %v3434_v2 }
 0x125   :  { %v3668_v14 = vpop.f32.mrb[0].mxu0  ;;  %v3671_v15 = vpop.f32.mrb[0].mxu1 }
 0x126   :  { %v3673_v16 = vpop.f32.mrb[1].mxu0  ;;  %3247 = vmatmul.mubr.msk.f32.gmra.mrb[26].mxu0 %vm2149_vm2, %v3665_v13  ;;  %v3677_v17 = vpop.f32.mrb[1].mxu1  ;;  %3263 = vmatmul.mubr.msk.f32.gmra.mrb[26].mxu1 %vm2149_vm2, %v3665_v13 }
 0x127   :  { %v1663_v18 = vpop.f32.mrb[2].mxu0  ;;  %2274 = vmatprep.mubr.f32.mxu0 %v3434_v2  ;;  %v1704_v20 = vpop.f32.mrb[2].mxu1  ;;  %2427 = vmatprep.mubr.f32.mxu1 %v3434_v2 }
 0x128   :  { %v1664_v21 = vpop.f32.mrb[3].mxu0  ;;  %v1705_v22 = vpop.f32.mrb[3].mxu1 }
 0x12a   :  { %3248 = vmatmul.mubr.msk.f32.gmra.mrb[28].mxu0 %vm2149_vm2, %v3685_v19  ;;  %3264 = vmatmul.mubr.msk.f32.gmra.mrb[28].mxu1 %vm2149_vm2, %v3685_v19 }
 0x12b   :  { %2280 = vmatprep.mubr.f32.mxu0 %v3434_v2  ;;  %2433 = vmatprep.mubr.f32.mxu1 %v3434_v2 }
 0x12e   :  { %3249 = vmatmul.mubr.msk.f32.gmra.mrb[30].mxu0 %vm2149_vm2, %v3696_v23  ;;  %3265 = vmatmul.mubr.msk.f32.gmra.mrb[30].mxu1 %vm2149_vm2, %v3696_v23 }
 0x12f   :  { %2286 = vmatprep.mubr.f32.mxu0 %v3434_v2  ;;  %2439 = vmatprep.mubr.f32.mxu1 %v3434_v2 }
 0x132   :  { %3250 = vmatmul.mubr.msk.f32.gmra.mrb[32].mxu0 %vm2149_vm2, %v3707_v24  ;;  %3266 = vmatmul.mubr.msk.f32.gmra.mrb[32].mxu1 %vm2149_vm2, %v3707_v24 }
 0x133   :  { %2292 = vmatprep.mubr.f32.mxu0 %v3434_v2  ;;  %2445 = vmatprep.mubr.f32.mxu1 %v3434_v2 }
 0x136   :  { %3251 = vmatmul.mubr.msk.f32.gmra.mrb[34].mxu0 %vm2149_vm2, %v3718_v25  ;;  %3267 = vmatmul.mubr.msk.f32.gmra.mrb[34].mxu1 %vm2149_vm2, %v3718_v25 }
 0x137   :  { %2298 = vmatprep.mubr.f32.mxu0 %v3434_v2  ;;  %2451 = vmatprep.mubr.f32.mxu1 %v3434_v2 }
 0x13a   :  { %3252 = vmatmul.mubr.msk.f32.gmra.mrb[36].mxu0 %vm2149_vm2, %v3729_v26  ;;  %3268 = vmatmul.mubr.msk.f32.gmra.mrb[36].mxu1 %vm2149_vm2, %v3729_v26 }
 0x13b   :  { %2304 = vmatprep.mubr.f32.mxu0 %v3434_v2  ;;  %2457 = vmatprep.mubr.f32.mxu1 %v3434_v2 }
 0x13e   :  { %3253 = vmatmul.mubr.msk.f32.gmra.mrb[38].mxu0 %vm2149_vm2, %v3740_v27  ;;  %3269 = vmatmul.mubr.msk.f32.gmra.mrb[38].mxu1 %vm2149_vm2, %v3740_v27 }
 0x13f   :  { %2310 = vmatprep.mubr.f32.mxu0 %v3434_v2  ;;  %2463 = vmatprep.mubr.f32.mxu1 %v3434_v2 }
 0x142   :  { %3254 = vmatmul.mubr.msk.f32.gmra.mrb[40].mxu0 %vm2149_vm2, %v3751_v28  ;;  %3270 = vmatmul.mubr.msk.f32.gmra.mrb[40].mxu1 %vm2149_vm2, %v3751_v28 }
 0x143   :  { %2316 = vmatprep.mubr.f32.mxu0 %v3434_v2  ;;  %2469 = vmatprep.mubr.f32.mxu1 %v3434_v2 }
 0x146   :  { %3255 = vmatmul.mubr.msk.f32.gmra.mrb[42].mxu0 %vm2149_vm2, %v3762_v29  ;;  %3271 = vmatmul.mubr.msk.f32.gmra.mrb[42].mxu1 %vm2149_vm2, %v3762_v29 }
 0x147   :  { %2322 = vmatprep.mubr.f32.mxu0 %v3434_v2  ;;  %2475 = vmatprep.mubr.f32.mxu1 %v3434_v2 }
 0x14a   :  { %3256 = vmatmul.mubr.msk.f32.gmra.mrb[44].mxu0 %vm2149_vm2, %v3773_v30  ;;  %3272 = vmatmul.mubr.msk.f32.gmra.mrb[44].mxu1 %vm2149_vm2, %v3773_v30 }
 0x14b   :  { %2328 = vmatprep.mubr.f32.mxu0 %v3434_v2  ;;  %2481 = vmatprep.mubr.f32.mxu1 %v3434_v2 }
 0x14d   :  { %v1741_v33 = vpop.f32.mrb[4].mxu0  ;;  %v1782_v35 = vpop.f32.mrb[4].mxu1 }
 0x14e   :  { %v3790_v34 = vadd.f32 %v1741_v33, %v305_v58  ;;  %v1743_v36 = vpop.f32.mrb[5].mxu0  ;;  %3257 = vmatmul.mubr.msk.f32.gmra.mrb[46].mxu0 %vm2149_vm2, %v3784_v32  ;;  %v3797_v37 = vadd.f32 %v1782_v35, %v313_v61  ;;  %v1784_v39 = vpop.f32.mrb[5].mxu1  ;;  %3273 = vmatmul.mubr.msk.f32.gmra.mrb[46].mxu1 %vm2149_vm2, %v3784_v32  ;;  %v300_v33 = vsub.s32 3, %v3541_v44 }
 0x14f   :  { %v3802_v38 = vadd.f32 %v1743_v36, %v309_v62  ;;  %v1745_v58 = vpop.f32.mrb[6].mxu0  ;;  %2334 = vmatprep.mubr.f32.mxu0 %v3434_v2  ;;  %v3815_v61 = vadd.f32 %v1784_v39, %v317_v63  ;;  %v1786_v42 = vpop.f32.mrb[6].mxu1  ;;  %2487 = vmatprep.mubr.f32.mxu1 %v3434_v2  ;;  %v3837_v63 = vld [vmem:[%s4135_s1 + $0x70] sm:$0xff] }
 0x150   :  { %v1746_v62 = vpop.f32.mrb[7].mxu0  ;;  %v1787_v43 = vpop.f32.mrb[7].mxu1 }
 0x152   :  { %3258 = vmatmul.mubr.msk.f32.gmra.mrb[48].mxu0 %vm2149_vm2, %v3810_v40  ;;  %3274 = vmatmul.mubr.msk.f32.gmra.mrb[48].mxu1 %vm2149_vm2, %v3810_v40 }
 0x153   :  { %2338 = vmatprep.mubr.f32.mxu0 %v3434_v2  ;;  %2491 = vmatprep.mubr.f32.mxu1 %v3434_v2 }
 0x156   :  { %3259 = vmatmul.mubr.msk.f32.gmra.mrb[50].mxu0 %vm2149_vm2, %v3826_v45  ;;  %3275 = vmatmul.mubr.msk.f32.gmra.mrb[50].mxu1 %vm2149_vm2, %v3826_v45 }
 0x157   :  { %2342 = vmatprep.mubr.f32.mxu0 %v3434_v2  ;;  %2495 = vmatprep.mubr.f32.mxu1 %v3434_v2 }
 0x15a   :  { %3260 = vmatmul.mubr.msk.f32.gmra.mrb[52].mxu0 %vm2149_vm2, %v3837_v63  ;;  %3276 = vmatmul.mubr.msk.f32.gmra.mrb[52].mxu1 %vm2149_vm2, %v3837_v63 }
 0x15b   :  { %2346 = vmatprep.mubr.f32.mxu0 %v3434_v2  ;;  %2499 = vmatprep.mubr.f32.mxu1 %v3434_v2 }
 0x15e   :  { %3261 = vmatmul.mubr.msk.f32.gmra.mrb[54].mxu0 %vm2149_vm2, %v3848_v41  ;;  %3277 = vmatmul.mubr.msk.f32.gmra.mrb[54].mxu1 %vm2149_vm2, %v3848_v41 }
 0x15f   :  { %2568 = vmatprep.mubr.f32.mxu0 %v3434_v2  ;;  %2721 = vmatprep.mubr.f32.mxu1 %v3434_v2 }
 0x162   :  { %3278 = vmatmul.mubr.msk.f32.vlgmr.msra.gmra.mrb[56].mxu0 %vm2149_vm2, %v3656_v9  ;;  %3294 = vmatmul.mubr.msk.f32.vlgmr.msra.gmra.mrb[56].mxu1 %vm2149_vm2, %v3656_v9 }
 0x163   :  { %2574 = vmatprep.mubr.f32.mxu0 %v3434_v2  ;;  %2727 = vmatprep.mubr.f32.mxu1 %v3434_v2 }
 0x166   :  { %3279 = vmatmul.mubr.msk.f32.gmra.mrb[58].mxu0 %vm2149_vm2, %v3665_v13  ;;  %3295 = vmatmul.mubr.msk.f32.gmra.mrb[58].mxu1 %vm2149_vm2, %v3665_v13 }
 0x167   :  { %2580 = vmatprep.mubr.f32.mxu0 %v3434_v2  ;;  %2733 = vmatprep.mubr.f32.mxu1 %v3434_v2 }
 0x16a   :  { %3280 = vmatmul.mubr.msk.f32.gmra.mrb[60].mxu0 %vm2149_vm2, %v3685_v19  ;;  %3296 = vmatmul.mubr.msk.f32.gmra.mrb[60].mxu1 %vm2149_vm2, %v3685_v19 }
 0x16b   :  { %2586 = vmatprep.mubr.f32.mxu0 %v3434_v2  ;;  %2739 = vmatprep.mubr.f32.mxu1 %v3434_v2 }
 0x16e   :  { %3281 = vmatmul.mubr.msk.f32.gmra.mrb[62].mxu0 %vm2149_vm2, %v3696_v23  ;;  %3297 = vmatmul.mubr.msk.f32.gmra.mrb[62].mxu1 %vm2149_vm2, %v3696_v23 }
 0x16f   :  { %2592 = vmatprep.mubr.f32.mxu0 %v3434_v2  ;;  %2745 = vmatprep.mubr.f32.mxu1 %v3434_v2 }
 0x172   :  { %3282 = vmatmul.mubr.msk.f32.gmra.mrb[64].mxu0 %vm2149_vm2, %v3707_v24  ;;  %3298 = vmatmul.mubr.msk.f32.gmra.mrb[64].mxu1 %vm2149_vm2, %v3707_v24 }
 0x173   :  { %2598 = vmatprep.mubr.f32.mxu0 %v3434_v2  ;;  %2751 = vmatprep.mubr.f32.mxu1 %v3434_v2 }
 0x175   :  { %v3887_v46 = vpop.f32.mrb[8].mxu0  ;;  %v3889_v47 = vpop.f32.mrb[8].mxu1 }
 0x176   :  { %v3891_v12 = vpop.f32.mrb[9].mxu0  ;;  %3283 = vmatmul.mubr.msk.f32.gmra.mrb[66].mxu0 %vm2149_vm2, %v3718_v25  ;;  %v3895_v48 = vpop.f32.mrb[9].mxu1  ;;  %3299 = vmatmul.mubr.msk.f32.gmra.mrb[66].mxu1 %vm2149_vm2, %v3718_v25 }
 0x177   :  { %v1827_v50 = vpop.f32.mrb[10].mxu0  ;;  %2604 = vmatprep.mubr.f32.mxu0 %v3434_v2  ;;  %v1868_v55 = vpop.f32.mrb[10].mxu1  ;;  %2757 = vmatprep.mubr.f32.mxu1 %v3434_v2 }
 0x178   :  { %v1828_v56 = vpop.f32.mrb[11].mxu0  ;;  %v1869_v57 = vpop.f32.mrb[11].mxu1 }
 0x17a   :  { %3284 = vmatmul.mubr.msk.f32.gmra.mrb[68].mxu0 %vm2149_vm2, %v3729_v26  ;;  %3300 = vmatmul.mubr.msk.f32.gmra.mrb[68].mxu1 %vm2149_vm2, %v3729_v26 }
 0x17b   :  { %2610 = vmatprep.mubr.f32.mxu0 %v3434_v2  ;;  %2763 = vmatprep.mubr.f32.mxu1 %v3434_v2 }
 0x17e   :  { %3285 = vmatmul.mubr.msk.f32.gmra.mrb[70].mxu0 %vm2149_vm2, %v3740_v27  ;;  %3301 = vmatmul.mubr.msk.f32.gmra.mrb[70].mxu1 %vm2149_vm2, %v3740_v27  ;;  %v288_v27 = vsub.s32 0, %v3541_v44 }
 0x17f   :  { %2616 = vmatprep.mubr.f32.mxu0 %v3434_v2  ;;  %2769 = vmatprep.mubr.f32.mxu1 %v3434_v2 }
 0x180   :  { %v321_v50 = vrot.slane %v3628_v0, %v288_v27 }
 0x182   :  { %3286 = vmatmul.mubr.msk.f32.gmra.mrb[72].mxu0 %vm2149_vm2, %v3751_v28  ;;  %3302 = vmatmul.mubr.msk.f32.gmra.mrb[72].mxu1 %vm2149_vm2, %v3751_v28 }
 0x183   :  { %2622 = vmatprep.mubr.f32.mxu0 %v3434_v2  ;;  %2775 = vmatprep.mubr.f32.mxu1 %v3434_v2 }
 0x186   :  { %3287 = vmatmul.mubr.msk.f32.gmra.mrb[74].mxu0 %vm2149_vm2, %v3762_v29  ;;  %3303 = vmatmul.mubr.msk.f32.gmra.mrb[74].mxu1 %vm2149_vm2, %v3762_v29  ;;  %v296_v29 = vsub.s32 2, %v3541_v44 }
 0x187   :  { %2628 = vmatprep.mubr.f32.mxu0 %v3434_v2  ;;  %2781 = vmatprep.mubr.f32.mxu1 %v3434_v2 }
 0x188   :  { %v297_v43 = vrot.slane %v3551_v51, %v296_v29  ;;  %v329_v57 = vrot.slane %v3628_v0, %v296_v29 }
 0x18a   :  { %3288 = vmatmul.mubr.msk.f32.gmra.mrb[76].mxu0 %vm2149_vm2, %v3773_v30  ;;  %3304 = vmatmul.mubr.msk.f32.gmra.mrb[76].mxu1 %vm2149_vm2, %v3773_v30  ;;  %v292_v30 = vsub.s32 1, %v3541_v44  ;;  %v4015_v55 = vadd.f32 %v3671_v15, %v297_v43 }
 0x18b   :  { %2634 = vmatprep.mubr.f32.mxu0 %v3434_v2  ;;  %2787 = vmatprep.mubr.f32.mxu1 %v3434_v2 }
 0x18c   :  { %v293_v44 = vrot.slane %v3551_v51, %v292_v30 }
 0x18e   :  { %3289 = vmatmul.mubr.msk.f32.gmra.mrb[78].mxu0 %vm2149_vm2, %v3784_v32  ;;  %3305 = vmatmul.mubr.msk.f32.gmra.mrb[78].mxu1 %vm2149_vm2, %v3784_v32  ;;  %v4018_v56 = vadd.f32 %v3673_v16, %v293_v44 }
 0x18f   :  { %2640 = vmatprep.mubr.f32.mxu0 %v3434_v2  ;;  %2793 = vmatprep.mubr.f32.mxu1 %v3434_v2 }
 0x192   :  { %3290 = vmatmul.mubr.msk.f32.gmra.mrb[80].mxu0 %vm2149_vm2, %v3810_v40  ;;  %3306 = vmatmul.mubr.msk.f32.gmra.mrb[80].mxu1 %vm2149_vm2, %v3810_v40  ;;  %v289_v40 = vrot.slane %v3551_v51, %v288_v27 }
 0x193   :  { %2644 = vmatprep.mubr.f32.mxu0 %v3434_v2  ;;  %2797 = vmatprep.mubr.f32.mxu1 %v3434_v2 }
 0x196   :  { %3291 = vmatmul.mubr.msk.f32.gmra.mrb[82].mxu0 %vm2149_vm2, %v3826_v45  ;;  %3307 = vmatmul.mubr.msk.f32.gmra.mrb[82].mxu1 %vm2149_vm2, %v3826_v45 }
 0x197   :  { %2648 = vmatprep.mubr.f32.mxu0 %v3434_v2  ;;  %2801 = vmatprep.mubr.f32.mxu1 %v3434_v2 }
 0x19a   :  { %3292 = vmatmul.mubr.msk.f32.gmra.mrb[84].mxu0 %vm2149_vm2, %v3837_v63  ;;  %3308 = vmatmul.mubr.msk.f32.gmra.mrb[84].mxu1 %vm2149_vm2, %v3837_v63  ;;  %v301_v63 = vrot.slane %v3551_v51, %v300_v33  ;;  %v333_v51 = vrot.slane %v3628_v0, %v300_v33 }
 0x19b   :  { %2652 = vmatprep.mubr.f32.mxu0 %v3434_v2  ;;  %2805 = vmatprep.mubr.f32.mxu1 %v3434_v2 }
 0x19d   :  { %v1905_v59 = vpop.f32.mrb[12].mxu0  ;;  %v1946_v3 = vpop.f32.mrb[12].mxu1 }
 0x19e   :  { %v3958_v60 = vadd.f32 %v1905_v59, %v337_v1  ;;  %v1907_v4 = vpop.f32.mrb[13].mxu0  ;;  %3293 = vmatmul.mubr.msk.f32.gmra.mrb[86].mxu0 %vm2149_vm2, %v3848_v41  ;;  %v3965_v31 = vadd.f32 %v1946_v3, %v345_v6  ;;  %v1948_v5 = vpop.f32.mrb[13].mxu1  ;;  %3309 = vmatmul.mubr.msk.f32.gmra.mrb[86].mxu1 %vm2149_vm2, %v3848_v41  ;;  %v4011_v41 = vadd.f32 %v3668_v14, %v289_v40 }
 0x19f   :  { %v3970_v2 = vadd.f32 %v1907_v4, %v341_v7  ;;  %v1909_v1 = vpop.f32.mrb[14].mxu0  ;;  %v3977_v9 = vadd.f32 %v1948_v5, %v349_v8  ;;  %v1950_v10 = vpop.f32.mrb[14].mxu1  ;;  %v282_v8 = vld [vmem:[%s4136_s2 + $0x10] sm:$0xff]  ;;  %v325_v59 = vrot.slane %v3628_v0, %v292_v30  ;;  %v4023_v4 = vadd.f32 %v3677_v17, %v301_v63  ;;  %s3435_s2 = smov [#allocation7]  }
 0x1a0   :  { %v1910_v11 = vpop.f32.mrb[15].mxu0  ;;  %v1951_v13 = vpop.f32.mrb[15].mxu1  ;;  %v369_v24 = vrot.slane %v282_v8, %v3546_v49  ;;  %v377_v25 = vrot.slane %v282_v8, %v3554_v52  ;;  %v373_v26 = vrot.slane %v282_v8, %v3557_v53  ;;  %v381_v28 = vrot.slane %v282_v8, %v3560_v54  ;;  %s2984_s30 = sshll.u32 %s3435_s2, 4  ;;  %s2985_s30 = int_to_ptr.vmem [resolvable:$true] %s2984_s30 }
 0x1a1   :  { %v4030_v11 = vadd.f32 %v3887_v46, %v321_v50  ;;  %v353_v13 = vrot.slane %v282_v8, %v288_v27  ;;  %v4034_v17 = vadd.f32 %v3889_v47, %v329_v57  ;;  %v4037_v0 = vadd.f32 %v3891_v12, %v325_v59  ;;  %s3401_s6 = scalar_lea.vmem %s2985_s30, 3072  ;;  %p3406_p3 = scmp.lt.s32.totalorder %s2985_s30, %s2985_s30 }
 0x1a2   :  { %p3402_p2 = scmp.ne.s32.totalorder %s2985_s30, %s3401_s6  ;;  %p3407_p4 = scmp.lt.s32.totalorder %s3401_s6, %s3401_s6 }
 0x1a4   :  { %p3408_p5 = por %p3407_p4, %p3406_p3 }
 0x1a6   :  { %p3409_p6 = pnand %p3408_p5, %p3402_p2 }
 0x1c5   :  { %v3979_v6 = vpop.f32.mrb[16].mxu0  ;;  %v3981_v18 = vpop.f32.mrb[16].mxu1 }
 0x1c6   :  { %v3983_v19 = vpop.f32.mrb[17].mxu0  ;;  %v3985_v7 = vpop.f32.mrb[17].mxu1 }
 0x1c7   :  { %v1991_v20 = vpop.f32.mrb[18].mxu0  ;;  %v2032_v21 = vpop.f32.mrb[18].mxu1 }
 0x1c8   :  { %v1992_v22 = vpop.f32.mrb[19].mxu0  ;;  %v2033_v23 = vpop.f32.mrb[19].mxu1  ;;  %v361_v21 = vrot.slane %v282_v8, %v296_v29 }
 0x1c9   :  { %v357_v22 = vrot.slane %v282_v8, %v292_v30 }
 0x1ca   :  { %v4050_v29 = vadd.f32 %v3981_v18, %v361_v21 }
 0x1ed   :  { %v2069_v32 = vpop.f32.mrb[20].mxu0  ;;  %v2110_v36 = vpop.f32.mrb[20].mxu1 }
 0x1ee   :  { %v3998_v35 = vadd.f32 %v2069_v32, %v369_v24  ;;  %v2071_v39 = vpop.f32.mrb[21].mxu0  ;;  %v4000_v49 = vadd.f32 %v2110_v36, %v377_v25  ;;  %v2112_v53 = vpop.f32.mrb[21].mxu1  ;;  %v4040_v24 = vadd.f32 %v3895_v48, %v333_v51  ;;  %v365_v25 = vrot.slane %v282_v8, %v300_v33 }
 0x1ef   :  { %v4002_v52 = vadd.f32 %v2071_v39, %v373_v26  ;;  %v2073_v58 = vpop.f32.mrb[22].mxu0  ;;  %v4005_v54 = vadd.f32 %v2112_v53, %v381_v28  ;;  %v2114_v42 = vpop.f32.mrb[22].mxu1  ;;  %v4046_v36 = vadd.f32 %v3979_v6, %v353_v13  ;;  %v4053_v48 = vadd.f32 %v3983_v19, %v357_v22 }
 0x1f0   :  { %v2074_v62 = vpop.f32.mrb[23].mxu0  ;;  %v2115_v45 = vpop.f32.mrb[23].mxu1  ;;  %v4056_v30 = vadd.f32 %v3985_v7, %v365_v25 }
 0x1f5   :  { %v2264_v3 = vpop.f32.mrb[24].mxu0  ;;  %v2417_v5 = vpop.f32.mrb[24].mxu1 }
 0x1f6   :  { %v2810_v14 = vmul.f32 %v2264_v3, %v4011_v41  ;;  %v2266_v1 = vpop.f32.mrb[25].mxu0  ;;  %v2812_v15 = vmul.f32 %v2417_v5, %v4015_v55  ;;  %v2419_v16 = vpop.f32.mrb[25].mxu1 }
 0x1f7   :  { %v2811_v10 = vmul.f32 %v2266_v1, %v4018_v56  ;;  %v2813_v20 = vmul.f32 %v2419_v16, %v4023_v4 }
 0x1f9   :  { %v2270_v23 = vpop.f32.mrb[26].mxu0  ;;  %v2423_v46 = vpop.f32.mrb[26].mxu1 }
 0x1fa   :  { %v2826_v26 = vmul.f32 %v2270_v23, %v4030_v11  ;;  %v2272_v28 = vpop.f32.mrb[27].mxu0  ;;  %v2828_v27 = vmul.f32 %v2423_v46, %v4034_v17  ;;  %v2425_v47 = vpop.f32.mrb[27].mxu1 }
 0x1fb   :  { %v2827_v32 = vmul.f32 %v2272_v28, %v4037_v0  ;;  %v2829_v12 = vmul.f32 %v2425_v47, %v4040_v24 }
 0x1fd   :  { %v2276_v8 = vpop.f32.mrb[28].mxu0  ;;  %v2429_v39 = vpop.f32.mrb[28].mxu1 }
 0x1fe   :  { %v2842_v33 = vmul.f32 %v2276_v8, %v4046_v36  ;;  %v2278_v53 = vpop.f32.mrb[29].mxu0  ;;  %v2844_v58 = vmul.f32 %v2429_v39, %v4050_v29  ;;  %v2431_v40 = vpop.f32.mrb[29].mxu1 }
 0x1ff   :  { %v2843_v6 = vmul.f32 %v2278_v53, %v4053_v48  ;;  %v2845_v42 = vmul.f32 %v2431_v40, %v4056_v30 }
 0x201   :  { %v2282_v18 = vpop.f32.mrb[30].mxu0  ;;  %v2435_v43 = vpop.f32.mrb[30].mxu1 }
 0x202   :  { %v2818_v62 = vadd.f32 %v2810_v14, %v2282_v18  ;;  %v2284_v19 = vpop.f32.mrb[31].mxu0  ;;  %v2820_v44 = vadd.f32 %v2812_v15, %v2435_v43  ;;  %v2437_v63 = vpop.f32.mrb[31].mxu1 }
 0x203   :  { %v2819_v45 = vadd.f32 %v2811_v10, %v2284_v19  ;;  %v2821_v50 = vadd.f32 %v2813_v20, %v2437_v63 }
 0x204   :  { %v2834_v7 = vadd.f32 %v2826_v26, %v2818_v62  ;;  %v2836_v57 = vadd.f32 %v2828_v27, %v2820_v44 }
 0x205   :  { %v2835_v59 = vadd.f32 %v2827_v32, %v2819_v45  ;;  %v2288_v3 = vpop.f32.mrb[32].mxu0  ;;  %v2837_v5 = vadd.f32 %v2829_v12, %v2821_v50  ;;  %v2441_v16 = vpop.f32.mrb[32].mxu1 }
 0x206   :  { %v2850_v51 = vadd.f32 %v2842_v33, %v2834_v7  ;;  %v2866_v1 = vmul.f32 %v2288_v3, %v4011_v41  ;;  %v2290_v13 = vpop.f32.mrb[33].mxu0  ;;  %v2852_v21 = vadd.f32 %v2844_v58, %v2836_v57  ;;  %v2868_v14 = vmul.f32 %v2441_v16, %v4015_v55  ;;  %v2443_v15 = vpop.f32.mrb[33].mxu1 }
 0x207   :  { %v2851_v22 = vadd.f32 %v2843_v6, %v2835_v59  ;;  %v2867_v23 = vmul.f32 %v2290_v13, %v4018_v56  ;;  %v2853_v10 = vadd.f32 %v2845_v42, %v2837_v5  ;;  %v2869_v20 = vmul.f32 %v2443_v15, %v4023_v4 }
 0x208   :  { %2858 = vst [vmem:[#allocation7] sm:$0xff] %v2850_v51  ;;  %2860 = vst [vmem:[#allocation7 + $0x10] sm:$0xff] %v2852_v21 }
 0x209   :  { %2859 = vst [vmem:[#allocation7 + $0x8] sm:$0xff] %v2851_v22  ;;  %v2294_v25 = vpop.f32.mrb[34].mxu0  ;;  %2861 = vst [vmem:[#allocation7 + $0x18] sm:$0xff] %v2853_v10  ;;  %v2447_v46 = vpop.f32.mrb[34].mxu1 }
 0x20a   :  { %v2882_v26 = vmul.f32 %v2294_v25, %v4030_v11  ;;  %v2296_v28 = vpop.f32.mrb[35].mxu0  ;;  %v2884_v27 = vmul.f32 %v2447_v46, %v4034_v17  ;;  %v2449_v47 = vpop.f32.mrb[35].mxu1 }
 0x20b   :  { %v2883_v32 = vmul.f32 %v2296_v28, %v4037_v0  ;;  %v2885_v12 = vmul.f32 %v2449_v47, %v4040_v24 }
 0x20d   :  { %v2300_v8 = vpop.f32.mrb[36].mxu0  ;;  %v2453_v39 = vpop.f32.mrb[36].mxu1 }
 0x20e   :  { %v2898_v33 = vmul.f32 %v2300_v8, %v4046_v36  ;;  %v2302_v53 = vpop.f32.mrb[37].mxu0  ;;  %v2900_v58 = vmul.f32 %v2453_v39, %v4050_v29  ;;  %v2455_v40 = vpop.f32.mrb[37].mxu1 }
 0x20f   :  { %v2899_v6 = vmul.f32 %v2302_v53, %v4053_v48  ;;  %v2901_v42 = vmul.f32 %v2455_v40, %v4056_v30 }
 0x211   :  { %v2306_v18 = vpop.f32.mrb[38].mxu0  ;;  %v2459_v43 = vpop.f32.mrb[38].mxu1 }
 0x212   :  { %v2874_v62 = vadd.f32 %v2866_v1, %v2306_v18  ;;  %v2308_v19 = vpop.f32.mrb[39].mxu0  ;;  %v2876_v44 = vadd.f32 %v2868_v14, %v2459_v43  ;;  %v2461_v63 = vpop.f32.mrb[39].mxu1 }
 0x213   :  { %v2875_v45 = vadd.f32 %v2867_v23, %v2308_v19  ;;  %v2877_v50 = vadd.f32 %v2869_v20, %v2461_v63 }
 0x214   :  { %v2890_v7 = vadd.f32 %v2882_v26, %v2874_v62  ;;  %v2892_v57 = vadd.f32 %v2884_v27, %v2876_v44 }
 0x215   :  { %v2891_v59 = vadd.f32 %v2883_v32, %v2875_v45  ;;  %v2312_v3 = vpop.f32.mrb[40].mxu0  ;;  %v2893_v5 = vadd.f32 %v2885_v12, %v2877_v50  ;;  %v2465_v13 = vpop.f32.mrb[40].mxu1 }
 0x216   :  { %v2906_v51 = vadd.f32 %v2898_v33, %v2890_v7  ;;  %v2922_v16 = vmul.f32 %v2312_v3, %v4011_v41  ;;  %v2314_v21 = vpop.f32.mrb[41].mxu0  ;;  %v2908_v22 = vadd.f32 %v2900_v58, %v2892_v57  ;;  %v2924_v1 = vmul.f32 %v2465_v13, %v4015_v55  ;;  %v2467_v14 = vpop.f32.mrb[41].mxu1 }
 0x217   :  { %v2907_v15 = vadd.f32 %v2899_v6, %v2891_v59  ;;  %v2923_v10 = vmul.f32 %v2314_v21, %v4018_v56  ;;  %v2909_v23 = vadd.f32 %v2901_v42, %v2893_v5  ;;  %v2925_v20 = vmul.f32 %v2467_v14, %v4023_v4 }
 0x218   :  { %2914 = vst [vmem:[#allocation7 + $0x40] sm:$0xff] %v2906_v51  ;;  %2916 = vst [vmem:[#allocation7 + $0x50] sm:$0xff] %v2908_v22 }
 0x219   :  { %2915 = vst [vmem:[#allocation7 + $0x48] sm:$0xff] %v2907_v15  ;;  %v2318_v25 = vpop.f32.mrb[42].mxu0  ;;  %2917 = vst [vmem:[#allocation7 + $0x58] sm:$0xff] %v2909_v23  ;;  %v2471_v41 = vpop.f32.mrb[42].mxu1 }
 0x21a   :  { %v2938_v26 = vmul.f32 %v2318_v25, %v4030_v11  ;;  %v2320_v46 = vpop.f32.mrb[43].mxu0  ;;  %v2940_v28 = vmul.f32 %v2471_v41, %v4034_v17  ;;  %v2473_v55 = vpop.f32.mrb[43].mxu1 }
 0x21b   :  { %v2939_v27 = vmul.f32 %v2320_v46, %v4037_v0  ;;  %v2941_v56 = vmul.f32 %v2473_v55, %v4040_v24 }
 0x21d   :  { %v2324_v32 = vpop.f32.mrb[44].mxu0  ;;  %v2477_v12 = vpop.f32.mrb[44].mxu1 }
 0x21e   :  { %v2954_v47 = vmul.f32 %v2324_v32, %v4046_v36  ;;  %v2326_v4 = vpop.f32.mrb[45].mxu0  ;;  %v2956_v8 = vmul.f32 %v2477_v12, %v4050_v29  ;;  %v2479_v39 = vpop.f32.mrb[45].mxu1 }
 0x21f   :  { %v2955_v33 = vmul.f32 %v2326_v4, %v4053_v48  ;;  %v2957_v11 = vmul.f32 %v2479_v39, %v4056_v30 }
 0x221   :  { %v2330_v53 = vpop.f32.mrb[46].mxu0  ;;  %v2483_v17 = vpop.f32.mrb[46].mxu1 }
 0x222   :  { %v2930_v58 = vadd.f32 %v2922_v16, %v2330_v53  ;;  %v2332_v6 = vpop.f32.mrb[47].mxu0  ;;  %v2932_v0 = vadd.f32 %v2924_v1, %v2483_v17  ;;  %v2485_v42 = vpop.f32.mrb[47].mxu1 }
 0x223   :  { %v2931_v40 = vadd.f32 %v2923_v10, %v2332_v6  ;;  %v2933_v18 = vadd.f32 %v2925_v20, %v2485_v42 }
 0x224   :  { %v2946_v24 = vadd.f32 %v2938_v26, %v2930_v58  ;;  %v2948_v62 = vadd.f32 %v2940_v28, %v2932_v0 }
 0x225   :  { %v2947_v36 = vadd.f32 %v2939_v27, %v2931_v40  ;;  %v2336_v43 = vpop.f32.mrb[48].mxu0  ;;  %v2949_v44 = vadd.f32 %v2941_v56, %v2933_v18  ;;  %v2489_v29 = vpop.f32.mrb[48].mxu1 }
 0x226   :  { %v2962_v19 = vadd.f32 %v2954_v47, %v2946_v24  ;;  %v2337_v45 = vpop.f32.mrb[49].mxu0  ;;  %v2964_v48 = vadd.f32 %v2956_v8, %v2948_v62  ;;  %v2490_v7 = vpop.f32.mrb[49].mxu1 }
 0x227   :  { %v2963_v63 = vadd.f32 %v2955_v33, %v2947_v36  ;;  %v2965_v30 = vadd.f32 %v2957_v11, %v2949_v44 }
 0x228   :  { %2970 = vst [vmem:[#allocation7 + $0x80] sm:$0xff] %v2962_v19  ;;  %2972 = vst [vmem:[#allocation7 + $0x90] sm:$0xff] %v2964_v48 }
 0x229   :  { %2971 = vst [vmem:[#allocation7 + $0x88] sm:$0xff] %v2963_v63  ;;  %v2340_v50 = vpop.f32.mrb[50].mxu0  ;;  %2973 = vst [vmem:[#allocation7 + $0x98] sm:$0xff] %v2965_v30  ;;  %v2493_v57 = vpop.f32.mrb[50].mxu1 }
 0x22a   :  { %v2341_v59 = vpop.f32.mrb[51].mxu0  ;;  %v2494_v3 = vpop.f32.mrb[51].mxu1 }
 0x22d   :  { %v2344_v51 = vpop.f32.mrb[52].mxu0  ;;  %v2497_v5 = vpop.f32.mrb[52].mxu1 }
 0x22e   :  { %v2345_v16 = vpop.f32.mrb[53].mxu0  ;;  %v2498_v13 = vpop.f32.mrb[53].mxu1 }
 0x231   :  { %v2348_v21 = vpop.f32.mrb[54].mxu0  ;;  %v2501_v22 = vpop.f32.mrb[54].mxu1 }
 0x232   :  { %v2349_v15 = vpop.f32.mrb[55].mxu0  ;;  %v2502_v1 = vpop.f32.mrb[55].mxu1 }
 0x235   :  { %v2570_v10 = vpop.f32.mrb[56].mxu0  ;;  %v2723_v23 = vpop.f32.mrb[56].mxu1 }
 0x236   :  { %v2814_v14 = vmul.f32 %v2570_v10, %v3790_v34  ;;  %v2572_v20 = vpop.f32.mrb[57].mxu0  ;;  %v2816_v25 = vmul.f32 %v2723_v23, %v3797_v37  ;;  %v2725_v41 = vpop.f32.mrb[57].mxu1 }
 0x237   :  { %v2815_v26 = vmul.f32 %v2572_v20, %v3802_v38  ;;  %v2817_v46 = vmul.f32 %v2725_v41, %v3815_v61 }
 0x239   :  { %v2576_v28 = vpop.f32.mrb[58].mxu0  ;;  %v2729_v55 = vpop.f32.mrb[58].mxu1 }
 0x23a   :  { %v2830_v27 = vmul.f32 %v2576_v28, %v3958_v60  ;;  %v2578_v56 = vpop.f32.mrb[59].mxu0  ;;  %v2832_v32 = vmul.f32 %v2729_v55, %v3965_v31  ;;  %v2731_v12 = vpop.f32.mrb[59].mxu1 }
 0x23b   :  { %v2831_v47 = vmul.f32 %v2578_v56, %v3970_v2  ;;  %v2833_v4 = vmul.f32 %v2731_v12, %v3977_v9 }
 0x23d   :  { %v2582_v8 = vpop.f32.mrb[60].mxu0  ;;  %v2735_v39 = vpop.f32.mrb[60].mxu1 }
 0x23e   :  { %v2846_v33 = vmul.f32 %v2582_v8, %v3998_v35  ;;  %v2584_v11 = vpop.f32.mrb[61].mxu0  ;;  %v2848_v53 = vmul.f32 %v2735_v39, %v4000_v49  ;;  %v2737_v17 = vpop.f32.mrb[61].mxu1 }
 0x23f   :  { %v2847_v58 = vmul.f32 %v2584_v11, %v4002_v52  ;;  %v2849_v6 = vmul.f32 %v2737_v17, %v4005_v54 }
 0x241   :  { %v2588_v0 = vpop.f32.mrb[62].mxu0  ;;  %v2741_v42 = vpop.f32.mrb[62].mxu1 }
 0x242   :  { %v2822_v40 = vadd.f32 %v2814_v14, %v2588_v0  ;;  %v2590_v24 = vpop.f32.mrb[63].mxu0  ;;  %v2824_v18 = vadd.f32 %v2816_v25, %v2741_v42  ;;  %v2743_v36 = vpop.f32.mrb[63].mxu1 }
 0x243   :  { %v2823_v62 = vadd.f32 %v2815_v26, %v2590_v24  ;;  %v2825_v19 = vadd.f32 %v2817_v46, %v2743_v36 }
 0x244   :  { %v2838_v43 = vadd.f32 %v2830_v27, %v2822_v40  ;;  %v2840_v44 = vadd.f32 %v2832_v32, %v2824_v18 }
 0x245   :  { %v2839_v29 = vadd.f32 %v2831_v47, %v2823_v62  ;;  %v2594_v45 = vpop.f32.mrb[64].mxu0  ;;  %v2841_v63 = vadd.f32 %v2833_v4, %v2825_v19  ;;  %v2747_v30 = vpop.f32.mrb[64].mxu1 }
 0x246   :  { %v2854_v48 = vadd.f32 %v2846_v33, %v2838_v43  ;;  %v2870_v7 = vmul.f32 %v2594_v45, %v3790_v34  ;;  %v2596_v50 = vpop.f32.mrb[65].mxu0  ;;  %v2856_v57 = vadd.f32 %v2848_v53, %v2840_v44  ;;  %v2872_v3 = vmul.f32 %v2747_v30, %v3797_v37  ;;  %v2749_v5 = vpop.f32.mrb[65].mxu1 }
 0x247   :  { %v2855_v59 = vadd.f32 %v2847_v58, %v2839_v29  ;;  %v2871_v51 = vmul.f32 %v2596_v50, %v3802_v38  ;;  %v2857_v16 = vadd.f32 %v2849_v6, %v2841_v63  ;;  %v2873_v13 = vmul.f32 %v2749_v5, %v3815_v61 }
 0x248   :  { %2862 = vst [vmem:[#allocation7 + $0x20] sm:$0xff] %v2854_v48  ;;  %2864 = vst [vmem:[#allocation7 + $0x30] sm:$0xff] %v2856_v57 }
 0x249   :  { %2863 = vst [vmem:[#allocation7 + $0x28] sm:$0xff] %v2855_v59  ;;  %v2600_v21 = vpop.f32.mrb[66].mxu0  ;;  %2865 = vst [vmem:[#allocation7 + $0x38] sm:$0xff] %v2857_v16  ;;  %v2753_v15 = vpop.f32.mrb[66].mxu1 }
 0x24a   :  { %v2886_v22 = vmul.f32 %v2600_v21, %v3958_v60  ;;  %v2602_v1 = vpop.f32.mrb[67].mxu0  ;;  %v2888_v10 = vmul.f32 %v2753_v15, %v3965_v31  ;;  %v2755_v23 = vpop.f32.mrb[67].mxu1 }
 0x24b   :  { %v2887_v14 = vmul.f32 %v2602_v1, %v3970_v2  ;;  %v2889_v20 = vmul.f32 %v2755_v23, %v3977_v9 }
 0x24d   :  { %v2606_v25 = vpop.f32.mrb[68].mxu0  ;;  %v2759_v41 = vpop.f32.mrb[68].mxu1 }
 0x24e   :  { %v2902_v26 = vmul.f32 %v2606_v25, %v3998_v35  ;;  %v2608_v46 = vpop.f32.mrb[69].mxu0  ;;  %v2904_v28 = vmul.f32 %v2759_v41, %v4000_v49  ;;  %v2761_v55 = vpop.f32.mrb[69].mxu1 }
 0x24f   :  { %v2903_v27 = vmul.f32 %v2608_v46, %v4002_v52  ;;  %v2905_v56 = vmul.f32 %v2761_v55, %v4005_v54 }
 0x251   :  { %v2612_v32 = vpop.f32.mrb[70].mxu0  ;;  %v2765_v12 = vpop.f32.mrb[70].mxu1 }
 0x252   :  { %v2878_v47 = vadd.f32 %v2870_v7, %v2612_v32  ;;  %v2614_v4 = vpop.f32.mrb[71].mxu0  ;;  %v2880_v8 = vadd.f32 %v2872_v3, %v2765_v12  ;;  %v2767_v39 = vpop.f32.mrb[71].mxu1 }
 0x253   :  { %v2879_v33 = vadd.f32 %v2871_v51, %v2614_v4  ;;  %v2881_v53 = vadd.f32 %v2873_v13, %v2767_v39 }
 0x254   :  { %v2894_v11 = vadd.f32 %v2886_v22, %v2878_v47  ;;  %v2896_v58 = vadd.f32 %v2888_v10, %v2880_v8 }
 0x255   :  { %v2895_v17 = vadd.f32 %v2887_v14, %v2879_v33  ;;  %v2618_v6 = vpop.f32.mrb[72].mxu0  ;;  %v2897_v40 = vadd.f32 %v2889_v20, %v2881_v53  ;;  %v2771_v24 = vpop.f32.mrb[72].mxu1 }
 0x256   :  { %v2910_v0 = vadd.f32 %v2902_v26, %v2894_v11  ;;  %v2926_v42 = vmul.f32 %v2618_v6, %v3790_v34  ;;  %v2620_v18 = vpop.f32.mrb[73].mxu0  ;;  %v2912_v62 = vadd.f32 %v2904_v28, %v2896_v58  ;;  %v2928_v43 = vmul.f32 %v2771_v24, %v3797_v37  ;;  %v2773_v44 = vpop.f32.mrb[73].mxu1 }
 0x257   :  { %v2911_v36 = vadd.f32 %v2903_v27, %v2895_v17  ;;  %v2927_v19 = vmul.f32 %v2620_v18, %v3802_v38  ;;  %v2913_v29 = vadd.f32 %v2905_v56, %v2897_v40  ;;  %v2929_v45 = vmul.f32 %v2773_v44, %v3815_v61 }
 0x258   :  { %2918 = vst [vmem:[#allocation7 + $0x60] sm:$0xff] %v2910_v0  ;;  %2920 = vst [vmem:[#allocation7 + $0x70] sm:$0xff] %v2912_v62 }
 0x259   :  { %2919 = vst [vmem:[#allocation7 + $0x68] sm:$0xff] %v2911_v36  ;;  %v2624_v48 = vpop.f32.mrb[74].mxu0  ;;  %2921 = vst [vmem:[#allocation7 + $0x78] sm:$0xff] %v2913_v29  ;;  %v2777_v34 = vpop.f32.mrb[74].mxu1 }
 0x25a   :  { %v2942_v63 = vmul.f32 %v2624_v48, %v3958_v60  ;;  %v2626_v7 = vpop.f32.mrb[75].mxu0  ;;  %v2944_v30 = vmul.f32 %v2777_v34, %v3965_v31  ;;  %v2779_v37 = vpop.f32.mrb[75].mxu1 }
 0x25b   :  { %v2943_v50 = vmul.f32 %v2626_v7, %v3970_v2  ;;  %v2945_v38 = vmul.f32 %v2779_v37, %v3977_v9 }
 0x25d   :  { %v2630_v57 = vpop.f32.mrb[76].mxu0  ;;  %v2783_v3 = vpop.f32.mrb[76].mxu1 }
 0x25e   :  { %v2958_v59 = vmul.f32 %v2630_v57, %v3998_v35  ;;  %v2632_v61 = vpop.f32.mrb[77].mxu0  ;;  %v2960_v51 = vmul.f32 %v2783_v3, %v4000_v49  ;;  %v2785_v16 = vpop.f32.mrb[77].mxu1 }
 0x25f   :  { %v2959_v5 = vmul.f32 %v2632_v61, %v4002_v52  ;;  %v2961_v60 = vmul.f32 %v2785_v16, %v4005_v54 }
 0x261   :  { %v2636_v13 = vpop.f32.mrb[78].mxu0  ;;  %v2789_v31 = vpop.f32.mrb[78].mxu1 }
 0x262   :  { %v2934_v21 = vadd.f32 %v2926_v42, %v2636_v13  ;;  %v2638_v22 = vpop.f32.mrb[79].mxu0  ;;  %v2936_v2 = vadd.f32 %v2928_v43, %v2789_v31  ;;  %v2791_v1 = vpop.f32.mrb[79].mxu1 }
 0x263   :  { %v2935_v15 = vadd.f32 %v2927_v19, %v2638_v22  ;;  %v2937_v10 = vadd.f32 %v2929_v45, %v2791_v1 }
 0x264   :  { %v2950_v9 = vadd.f32 %v2942_v63, %v2934_v21  ;;  %v2952_v14 = vadd.f32 %v2944_v30, %v2936_v2 }
 0x265   :  { %v2951_v35 = vadd.f32 %v2943_v50, %v2935_v15  ;;  %v2642_v23 = vpop.f32.mrb[80].mxu0  ;;  %v2953_v20 = vadd.f32 %v2945_v38, %v2937_v10  ;;  %v2795_v52 = vpop.f32.mrb[80].mxu1 }
 0x266   :  { %v2966_v49 = vadd.f32 %v2958_v59, %v2950_v9  ;;  %v2643_v25 = vpop.f32.mrb[81].mxu0  ;;  %v2968_v26 = vadd.f32 %v2960_v51, %v2952_v14  ;;  %v2796_v41 = vpop.f32.mrb[81].mxu1 }
 0x267   :  { %v2967_v54 = vadd.f32 %v2959_v5, %v2951_v35  ;;  %v2969_v46 = vadd.f32 %v2961_v60, %v2953_v20 }
 0x268   :  { %2974 = vst [vmem:[#allocation7 + $0xa0] sm:$0xff] %v2966_v49  ;;  %2976 = vst [vmem:[#allocation7 + $0xb0] sm:$0xff] %v2968_v26 }
 0x269   :  { %2975 = vst [vmem:[#allocation7 + $0xa8] sm:$0xff] %v2967_v54  ;;  %v2646_v28 = vpop.f32.mrb[82].mxu0  ;;  %2977 = vst [vmem:[#allocation7 + $0xb8] sm:$0xff] %v2969_v46  ;;  %v2799_v27 = vpop.f32.mrb[82].mxu1 }
 0x26a   :  { %v2647_v55 = vpop.f32.mrb[83].mxu0  ;;  %v2800_v56 = vpop.f32.mrb[83].mxu1 }
 0x26b   :  { %3412 = shalt.err (!%p3409_p6)
}
 0x26c   :  { %s3413_s9 = scalar_lea.hbm %s4139_s5, 3072 }
 0x26d   :  { %p3414_p7 = scmp.ne.s32.totalorder %s4139_s5, %s3413_s9  ;;  %p3417_p8 = scmp.lt.u32.totalorder %s3413_s9, %s4139_s5 }
 0x26f   :  { %p3419_p9 = pnand %p3417_p8, %p3414_p7 }
 0x271   :  { %3422 = shalt.err (!%p3419_p9)
}
 0x272   :  { %2987 = dma.vmem_to_hbm [thread:$0]  %s2985_s30, 3072, %s4139_s5, [#allocation4]   ;;  %v2650_v32 = vpop.f32.mrb[84].mxu0  ;;  %v2803_v47 = vpop.f32.mrb[84].mxu1 }
 0x273   :  { %v2651_v12 = vpop.f32.mrb[85].mxu0  ;;  %v2804_v4 = vpop.f32.mrb[85].mxu1 }
 0x274   :  { %v2654_v8 = vpop.f32.mrb[86].mxu0  ;;  %v2807_v33 = vpop.f32.mrb[86].mxu1 }
 0x275   :  { %v2655_v39 = vpop.f32.mrb[87].mxu0  ;;  %v2808_v11 = vpop.f32.mrb[87].mxu1 }
 0x276   :  { %3427 = dma.done.wait [#allocation4], 3072  }
 0x277   :  { %3428 = vsyncadd [#allocation4], 4294964224 }
 0x278   :  { %2991 = vsyncpa [#allocation3], 1 }
 0x279   :  { %2992 = vsyncpa [#allocation6], 1 }
 0x27a   :  { %2993 = vsyncpa [#allocation4], 1 }

</bundles_post_ra>
